<compile_context>
chip_gen: v6e
topology: v6e:2x2x1
jax: 0.10.0
libtpu: 0.0.40
codegen_flags: <defaults>
</compile_context>

<pallas_src>
import functools

import jax
import jax.numpy as jnp
from jax.experimental import pallas as pl
from jax.experimental.pallas import tpu as pltpu

VOCAB = 20
D_MODEL = 20     # embedding dim == lstm input == lstm hidden
MAX_LEN = 10
N_OUT = 2


# ----------------------------------------------------------------------------
# Pallas kernel: fused embedding + PE + 2-layer LSTM + final Linear
# ----------------------------------------------------------------------------
def lstm2_kernel(tok_ref,    # (B_total*S,) int32, SMEM (whole array)
                 emb_ref,    # (VOCAB, H) f32, VMEM
                 pe_ref,     # (S, H)     f32, VMEM
                 wih0_ref,   # (H, 4H)    gate cols reordered to [i,f,o,g]
                 whh0_ref,   # (H, 4H)
                 b0_ref,     # (1, 4H)
                 w1_ref,     # (2H, 4H)   rows = [W_ih1; W_hh1]
                 b1_ref,     # (1, 4H)
                 wfc_ref,    # (H, 2)
                 bfc_ref,    # (1, 2)
                 out_ref,    # (B, 2) f32 (B = batch block)
                 x_scratch,  # (B*S, H) f32 VMEM scratch
                 *, compute_dtype):
    B = out_ref.shape[0]
    S, H = pe_ref.shape
    H3 = 3 * H
    cd = compute_dtype

    # Weights loaded (and optionally cast to bf16 for single-pass MXU) once.
    wih0 = wih0_ref[...].astype(cd)
    whh0 = whh0_ref[...].astype(cd)
    w1 = w1_ref[...].astype(cd)
    # Hoisted layer-1 bias broadcast (used every step, broadcast once).
    b1 = jnp.broadcast_to(b1_ref[...], (B, 4 * H))

    # ---- prologue: work that is independent of the recurrent chain ---------
    # Fused embedding gather + positional-encoding add (tokens are SMEM
    # scalars; emb rows fetched with a dynamic sublane slice).
    base = pl.program_id(0) * B * S
    for b in range(B):
        for s in range(S):
            r = b * S + s
            tok = tok_ref[base + r]
            x_scratch[pl.ds(r, 1), :] = (emb_ref[pl.ds(tok, 1), :]
                                         + pe_ref[pl.ds(s, 1), :])

    # Layer-0 input projection hoisted out of the time loop: one well-shaped
    # matmul (+ b0) instead of S dependent ones inside the recurrence.
    x = x_scratch[...].astype(cd)                                   # (B*S, H)
    proj0 = (jnp.dot(x, wih0, preferred_element_type=jnp.float32)
             + b0_ref[...])                                         # (B*S, 4H)
    proj0 = proj0.reshape(B, S, 4 * H)

    # ---- recurrence: the latency-critical dependent chain ------------------
    h0 = jnp.zeros((B, H), jnp.float32)
    c0 = jnp.zeros((B, H), jnp.float32)
    h1 = jnp.zeros((B, H), jnp.float32)
    c1 = jnp.zeros((B, H), jnp.float32)

    def apply_gates(gates, c):
        # Gate column order is [i, f, o | g]: one sigmoid + one tanh per cell.
        sg = jax.nn.sigmoid(gates[:, :H3])
        g = jnp.tanh(gates[:, H3:])
        i = sg[:, 0:H]
        f = sg[:, H:2 * H]
        o = sg[:, 2 * H:H3]
        c_new = f * c + i * g
        h_new = o * jnp.tanh(c_new)
        return h_new, c_new

    for t in range(S):  # S is small and static -> unrolled
        # Layer 0: only the recurrent matmul sits on the dependent chain.
        g0 = proj0[:, t, :] + jnp.dot(h0.astype(cd), whh0,
                                      preferred_element_type=jnp.float32)
        h0, c0 = apply_gates(g0, c0)
        # Layer 1: input + recurrent matmuls fused into one (B,2H)@(2H,4H) dot.
        xh = jnp.concatenate([h0, h1], axis=1).astype(cd)
        g1 = jnp.dot(xh, w1, preferred_element_type=jnp.float32) + b1
        h1, c1 = apply_gates(g1, c1)

    # ---- epilogue: final linear on the last hidden state of LSTM-1 ---------
    out_ref[...] = (jnp.dot(h1, wfc_ref[...], preferred_element_type=jnp.float32)
                    + bfc_ref[...])


def run_lstm2_kernel(tokens_flat, pe, kp, B, S, *,
                     compute_dtype=jnp.bfloat16, batch_block=None):
    H = D_MODEL
    bb = B if batch_block is None else batch_block
    assert B % bb == 0, "batch_block must divide the batch"
    grid = (B // bb,)   # shards across TensorCores on v7x for large batches

    vmem = pl.BlockSpec(memory_space=pltpu.MemorySpace.VMEM)   # whole array
    smem = pl.BlockSpec(memory_space=pltpu.MemorySpace.SMEM)   # token scalars

    kernel = functools.partial(lstm2_kernel, compute_dtype=compute_dtype)
    return pl.pallas_call(
        kernel,
        out_shape=jax.ShapeDtypeStruct((B, N_OUT), jnp.float32),
        grid=grid,
        in_specs=[smem,                 # tokens (B*S,) int32
                  vmem, vmem,           # emb, pe
                  vmem, vmem, vmem,     # wih0, whh0, b0
                  vmem, vmem,           # w1 (stacked), b1
                  vmem, vmem],          # wfc, bfc
        # NOTE: if bb < B, bb must be a multiple of 8 (block-shape rule).
        out_specs=pl.BlockSpec((bb, N_OUT), lambda i: (i, 0)),
        scratch_shapes=[pltpu.VMEM((bb * S, H), jnp.float32)],
        compiler_params=pltpu.CompilerParams(
            dimension_semantics=("parallel",)),
    )(tokens_flat, kp["emb"], pe,
      kp["wih0"], kp["whh0"], kp["b0"],
      kp["w1"], kp["b1"], kp["wfc"], kp["bfc"])


# ----------------------------------------------------------------------------
# Glue: PE table, parameter init, packing (gate reorder + weight stacking)
# ----------------------------------------------------------------------------
def positional_encoding(max_len, d_model):
    pos = jnp.arange(max_len, dtype=jnp.float32)[:, None]                # (L,1)
    two_i = jnp.arange(0, d_model, 2, dtype=jnp.float32)                 # (D/2,)
    angle = pos / jnp.power(10000.0, two_i / d_model)                    # (L,D/2)
    enc = jnp.zeros((max_len, d_model), jnp.float32)
    enc = enc.at[:, 0::2].set(jnp.sin(angle))
    enc = enc.at[:, 1::2].set(jnp.cos(angle))
    return enc


def init_params(key):
    """Standard (PyTorch-equivalent) params: transposed weights, gates [i,f,g,o]."""
    H = D_MODEL
    k = 1.0 / jnp.sqrt(H)
    keys = jax.random.split(key, 12)

    def u(kk, shape):
        return jax.random.uniform(kk, shape, jnp.float32, -k, k)

    return {
        "emb": jax.random.normal(keys[0], (VOCAB, D_MODEL), jnp.float32),
        "wih0": u(keys[1], (H, 4 * H)),
        "whh0": u(keys[2], (H, 4 * H)),
        "b0": (u(keys[3], (1, 4 * H)) + u(keys[4], (1, 4 * H))),  # b_ih + b_hh
        "wih1": u(keys[5], (H, 4 * H)),
        "whh1": u(keys[6], (H, 4 * H)),
        "b1": (u(keys[7], (1, 4 * H)) + u(keys[8], (1, 4 * H))),
        "wfc": u(keys[9], (H, N_OUT)),
        "bfc": u(keys[10], (1, N_OUT)),
    }


def pack_params(p):
    """Kernel-side reparameterization: gate cols [i,f,g,o]->[i,f,o,g], stack
    layer-1 weights row-wise, precompute the PE table."""
    H = D_MODEL

    def reorder(w):
        return jnp.concatenate(
            [w[..., 0:H], w[..., H:2 * H], w[..., 3 * H:4 * H], w[..., 2 * H:3 * H]],
            axis=-1)

    return {
        "emb": p["emb"],
        "wih0": reorder(p["wih0"]),
        "whh0": reorder(p["whh0"]),
        "b0": reorder(p["b0"]),
        "w1": reorder(jnp.concatenate([p["wih1"], p["whh1"]], axis=0)),  # (2H,4H)
        "b1": reorder(p["b1"]),
        "wfc": p["wfc"],
        "bfc": p["bfc"],
        "pe": positional_encoding(MAX_LEN, D_MODEL),
    }


def lstm2_forward(tokens, kp, compute_dtype=jnp.bfloat16):
    B, S = tokens.shape
    tokens_flat = tokens.reshape(B * S).astype(jnp.int32)
    pe = kp["pe"][:S, :]
    return run_lstm2_kernel(tokens_flat, pe, kp, B, S,
                            compute_dtype=compute_dtype)   # (B, 2)


# ----------------------------------------------------------------------------
# Pure-JAX reference (matches the PyTorch module semantics)
# ----------------------------------------------------------------------------
def lstm2_reference(tokens, params):
    B, S = tokens.shape
    H = D_MODEL
    emb = jnp.take(params["emb"], tokens, axis=0)
    pe = positional_encoding(MAX_LEN, D_MODEL)[:S, :]
    x = emb + pe[None, :, :]

    def cell(x_t, h, c, wih, whh, b):
        gates = x_t @ wih + h @ whh + b            # gate order [i,f,g,o]
        i = jax.nn.sigmoid(gates[:, 0 * H:1 * H])
        f = jax.nn.sigmoid(gates[:, 1 * H:2 * H])
        g = jnp.tanh(gates[:, 2 * H:3 * H])
        o = jax.nn.sigmoid(gates[:, 3 * H:4 * H])
        c = f * c + i * g
        h = o * jnp.tanh(c)
        return h, c

    h0 = jnp.zeros((B, H)); c0 = jnp.zeros((B, H))
    h1 = jnp.zeros((B, H)); c1 = jnp.zeros((B, H))
    for t in range(S):
        h0, c0 = cell(x[:, t, :], h0, c0, params["wih0"], params["whh0"], params["b0"])
        h1, c1 = cell(h0, h1, c1, params["wih1"], params["whh1"], params["b1"])
    return h1 @ params["wfc"] + params["bfc"]


if __name__ == "__main__":
    key = jax.random.PRNGKey(0)
    pkey, tkey = jax.random.split(key)
    params = init_params(pkey)
    kparams = pack_params(params)

    B, S = 2, 8   # seq <= max_len (10), tokens in [0, 20)
    tokens = jax.random.randint(tkey, (B, S), 0, VOCAB, dtype=jnp.int32)

    # Performance path: bf16 MXU operands, f32 accumulation / state.
    out = jax.block_until_ready(lstm2_forward(tokens, kparams))
    # f32 path: proves the reparameterization (gate reorder, weight stacking,
    # hoisted projection, in-kernel embedding/PE) is numerically exact.
    out_f32 = jax.block_until_ready(
        lstm2_forward(tokens, kparams, compute_dtype=jnp.float32))

    ref = lstm2_reference(tokens, params)
    assert out.shape == (B, N_OUT), out.shape
    assert jnp.allclose(out_f32, ref, atol=1e-4, rtol=1e-4), (out_f32, ref)
    # bf16 operands drift only by rounding (per review: relaxed tolerance).
    assert jnp.allclose(out, ref, atol=1e-1, rtol=5e-2), (out, ref)
    print("KERNEL_OK")
</pallas_src>

<mosaic_0001>
module attributes {stable_mosaic.version = 11 : i64} {
  func.func @lstm2_kernel(%arg0: i32, %arg1: memref<16xi32, #tpu.memory_space<smem>>, %arg2: memref<20x20xf32, #tpu.memory_space<vmem>>, %arg3: memref<8x20xf32, #tpu.memory_space<vmem>>, %arg4: memref<20x80xf32, #tpu.memory_space<vmem>>, %arg5: memref<20x80xf32, #tpu.memory_space<vmem>>, %arg6: memref<1x80xf32, #tpu.memory_space<vmem>>, %arg7: memref<40x80xf32, #tpu.memory_space<vmem>>, %arg8: memref<1x80xf32, #tpu.memory_space<vmem>>, %arg9: memref<20x2xf32, #tpu.memory_space<vmem>>, %arg10: memref<1x2xf32, #tpu.memory_space<vmem>>, %arg11: memref<2x2xf32, #tpu.memory_space<vmem>>, %arg12: memref<16x20xf32, #tpu.memory_space<vmem>>) attributes {dimension_semantics = [#tpu.dimension_semantics<parallel>], iteration_bounds = array<i64: 1>, scalar_prefetch = 0 : i64, scratch_operands = 1 : i64, tpu.core_type = #tpu.core_type<tc>, window_params = [{transform_indices = @transform_0, window_bounds = array<i64: 16>}, {pipeline_mode = #tpu.pipeline_mode<synchronous>, transform_indices = @transform_1, window_bounds = array<i64: 20, 20>}, {pipeline_mode = #tpu.pipeline_mode<synchronous>, transform_indices = @transform_2, window_bounds = array<i64: 8, 20>}, {pipeline_mode = #tpu.pipeline_mode<synchronous>, transform_indices = @transform_3, window_bounds = array<i64: 20, 80>}, {pipeline_mode = #tpu.pipeline_mode<synchronous>, transform_indices = @transform_4, window_bounds = array<i64: 20, 80>}, {pipeline_mode = #tpu.pipeline_mode<synchronous>, transform_indices = @transform_5, window_bounds = array<i64: 1, 80>}, {pipeline_mode = #tpu.pipeline_mode<synchronous>, transform_indices = @transform_6, window_bounds = array<i64: 40, 80>}, {pipeline_mode = #tpu.pipeline_mode<synchronous>, transform_indices = @transform_7, window_bounds = array<i64: 1, 80>}, {pipeline_mode = #tpu.pipeline_mode<synchronous>, transform_indices = @transform_8, window_bounds = array<i64: 20, 2>}, {pipeline_mode = #tpu.pipeline_mode<synchronous>, transform_indices = @transform_9, window_bounds = array<i64: 1, 2>}, {transform_indices = @transform_10, window_bounds = array<i64: 2, 2>}]} {
    %c0 = arith.constant 0 : index
    %c0_0 = arith.constant 0 : index
    %0 = vector.load %arg4[%c0, %c0_0] : memref<20x80xf32, #tpu.memory_space<vmem>>, vector<20x80xf32>
    %1 = arith.truncf %0 : vector<20x80xf32> to vector<20x80xbf16>
    %c0_1 = arith.constant 0 : index
    %c0_2 = arith.constant 0 : index
    %2 = vector.load %arg5[%c0_1, %c0_2] : memref<20x80xf32, #tpu.memory_space<vmem>>, vector<20x80xf32>
    %3 = arith.truncf %2 : vector<20x80xf32> to vector<20x80xbf16>
    %c0_3 = arith.constant 0 : index
    %c0_4 = arith.constant 0 : index
    %4 = vector.load %arg7[%c0_3, %c0_4] : memref<40x80xf32, #tpu.memory_space<vmem>>, vector<40x80xf32>
    %5 = arith.truncf %4 : vector<40x80xf32> to vector<40x80xbf16>
    %c0_5 = arith.constant 0 : index
    %c0_6 = arith.constant 0 : index
    %6 = vector.load %arg8[%c0_5, %c0_6] : memref<1x80xf32, #tpu.memory_space<vmem>>, vector<1x80xf32>
    %7 = vector.shape_cast %6 : vector<1x80xf32> to vector<1x80xf32>
    %8 = vector.broadcast %7 : vector<1x80xf32> to vector<2x80xf32>
    %c2_i32 = arith.constant 2 : i32
    %9 = arith.muli %arg0, %c2_i32 : i32
    %c8_i32 = arith.constant 8 : i32
    %10 = arith.muli %9, %c8_i32 : i32
    %c0_i32 = arith.constant 0 : i32
    %11 = arith.addi %10, %c0_i32 : i32
    %12 = arith.index_cast %11 : i32 to index
    %13 = memref.load %arg1[%12] : memref<16xi32, #tpu.memory_space<smem>>
    %14 = arith.index_cast %13 : i32 to index
    %c0_7 = arith.constant 0 : index
    %15 = vector.load %arg2[%14, %c0_7] : memref<20x20xf32, #tpu.memory_space<vmem>>, vector<1x20xf32>
    %c0_8 = arith.constant 0 : index
    %c0_9 = arith.constant 0 : index
    %16 = vector.load %arg3[%c0_8, %c0_9] : memref<8x20xf32, #tpu.memory_space<vmem>>, vector<1x20xf32>
    %17 = arith.addf %15, %16 : vector<1x20xf32>
    %c0_10 = arith.constant 0 : index
    %c0_11 = arith.constant 0 : index
    %18 = vector.load %arg12[%c0_10, %c0_11] : memref<16x20xf32, #tpu.memory_space<vmem>>, vector<1x20xf32>
    tpu.vector_store %arg12[%c0_10, %c0_11], %17 {strides = array<i32>} : memref<16x20xf32, #tpu.memory_space<vmem>>, vector<1x20xf32>,
    %c1_i32 = arith.constant 1 : i32
    %19 = arith.addi %10, %c1_i32 : i32
    %20 = arith.index_cast %19 : i32 to index
    %21 = memref.load %arg1[%20] : memref<16xi32, #tpu.memory_space<smem>>
    %22 = arith.index_cast %21 : i32 to index
    %c0_12 = arith.constant 0 : index
    %23 = vector.load %arg2[%22, %c0_12] : memref<20x20xf32, #tpu.memory_space<vmem>>, vector<1x20xf32>
    %c1 = arith.constant 1 : index
    %c0_13 = arith.constant 0 : index
    %24 = vector.load %arg3[%c1, %c0_13] : memref<8x20xf32, #tpu.memory_space<vmem>>, vector<1x20xf32>
    %25 = arith.addf %23, %24 : vector<1x20xf32>
    %c1_14 = arith.constant 1 : index
    %c0_15 = arith.constant 0 : index
    %26 = vector.load %arg12[%c1_14, %c0_15] : memref<16x20xf32, #tpu.memory_space<vmem>>, vector<1x20xf32>
    tpu.vector_store %arg12[%c1_14, %c0_15], %25 {strides = array<i32>} : memref<16x20xf32, #tpu.memory_space<vmem>>, vector<1x20xf32>,
    %c2_i32_16 = arith.constant 2 : i32
    %27 = arith.addi %10, %c2_i32_16 : i32
    %28 = arith.index_cast %27 : i32 to index
    %29 = memref.load %arg1[%28] : memref<16xi32, #tpu.memory_space<smem>>
    %30 = arith.index_cast %29 : i32 to index
    %c0_17 = arith.constant 0 : index
    %31 = vector.load %arg2[%30, %c0_17] : memref<20x20xf32, #tpu.memory_space<vmem>>, vector<1x20xf32>
    %c2 = arith.constant 2 : index
    %c0_18 = arith.constant 0 : index
    %32 = vector.load %arg3[%c2, %c0_18] : memref<8x20xf32, #tpu.memory_space<vmem>>, vector<1x20xf32>
    %33 = arith.addf %31, %32 : vector<1x20xf32>
    %c2_19 = arith.constant 2 : index
    %c0_20 = arith.constant 0 : index
    %34 = vector.load %arg12[%c2_19, %c0_20] : memref<16x20xf32, #tpu.memory_space<vmem>>, vector<1x20xf32>
    tpu.vector_store %arg12[%c2_19, %c0_20], %33 {strides = array<i32>} : memref<16x20xf32, #tpu.memory_space<vmem>>, vector<1x20xf32>,
    %c3_i32 = arith.constant 3 : i32
    %35 = arith.addi %10, %c3_i32 : i32
    %36 = arith.index_cast %35 : i32 to index
    %37 = memref.load %arg1[%36] : memref<16xi32, #tpu.memory_space<smem>>
    %38 = arith.index_cast %37 : i32 to index
    %c0_21 = arith.constant 0 : index
    %39 = vector.load %arg2[%38, %c0_21] : memref<20x20xf32, #tpu.memory_space<vmem>>, vector<1x20xf32>
    %c3 = arith.constant 3 : index
    %c0_22 = arith.constant 0 : index
    %40 = vector.load %arg3[%c3, %c0_22] : memref<8x20xf32, #tpu.memory_space<vmem>>, vector<1x20xf32>
    %41 = arith.addf %39, %40 : vector<1x20xf32>
    %c3_23 = arith.constant 3 : index
    %c0_24 = arith.constant 0 : index
    %42 = vector.load %arg12[%c3_23, %c0_24] : memref<16x20xf32, #tpu.memory_space<vmem>>, vector<1x20xf32>
    tpu.vector_store %arg12[%c3_23, %c0_24], %41 {strides = array<i32>} : memref<16x20xf32, #tpu.memory_space<vmem>>, vector<1x20xf32>,
    %c4_i32 = arith.constant 4 : i32
    %43 = arith.addi %10, %c4_i32 : i32
    %44 = arith.index_cast %43 : i32 to index
    %45 = memref.load %arg1[%44] : memref<16xi32, #tpu.memory_space<smem>>
    %46 = arith.index_cast %45 : i32 to index
    %c0_25 = arith.constant 0 : index
    %47 = vector.load %arg2[%46, %c0_25] : memref<20x20xf32, #tpu.memory_space<vmem>>, vector<1x20xf32>
    %c4 = arith.constant 4 : index
    %c0_26 = arith.constant 0 : index
    %48 = vector.load %arg3[%c4, %c0_26] : memref<8x20xf32, #tpu.memory_space<vmem>>, vector<1x20xf32>
    %49 = arith.addf %47, %48 : vector<1x20xf32>
    %c4_27 = arith.constant 4 : index
    %c0_28 = arith.constant 0 : index
    %50 = vector.load %arg12[%c4_27, %c0_28] : memref<16x20xf32, #tpu.memory_space<vmem>>, vector<1x20xf32>
    tpu.vector_store %arg12[%c4_27, %c0_28], %49 {strides = array<i32>} : memref<16x20xf32, #tpu.memory_space<vmem>>, vector<1x20xf32>,
    %c5_i32 = arith.constant 5 : i32
    %51 = arith.addi %10, %c5_i32 : i32
    %52 = arith.index_cast %51 : i32 to index
    %53 = memref.load %arg1[%52] : memref<16xi32, #tpu.memory_space<smem>>
    %54 = arith.index_cast %53 : i32 to index
    %c0_29 = arith.constant 0 : index
    %55 = vector.load %arg2[%54, %c0_29] : memref<20x20xf32, #tpu.memory_space<vmem>>, vector<1x20xf32>
    %c5 = arith.constant 5 : index
    %c0_30 = arith.constant 0 : index
    %56 = vector.load %arg3[%c5, %c0_30] : memref<8x20xf32, #tpu.memory_space<vmem>>, vector<1x20xf32>
    %57 = arith.addf %55, %56 : vector<1x20xf32>
    %c5_31 = arith.constant 5 : index
    %c0_32 = arith.constant 0 : index
    %58 = vector.load %arg12[%c5_31, %c0_32] : memref<16x20xf32, #tpu.memory_space<vmem>>, vector<1x20xf32>
    tpu.vector_store %arg12[%c5_31, %c0_32], %57 {strides = array<i32>} : memref<16x20xf32, #tpu.memory_space<vmem>>, vector<1x20xf32>,
    %c6_i32 = arith.constant 6 : i32
    %59 = arith.addi %10, %c6_i32 : i32
    %60 = arith.index_cast %59 : i32 to index
    %61 = memref.load %arg1[%60] : memref<16xi32, #tpu.memory_space<smem>>
    %62 = arith.index_cast %61 : i32 to index
    %c0_33 = arith.constant 0 : index
    %63 = vector.load %arg2[%62, %c0_33] : memref<20x20xf32, #tpu.memory_space<vmem>>, vector<1x20xf32>
    %c6 = arith.constant 6 : index
    %c0_34 = arith.constant 0 : index
    %64 = vector.load %arg3[%c6, %c0_34] : memref<8x20xf32, #tpu.memory_space<vmem>>, vector<1x20xf32>
    %65 = arith.addf %63, %64 : vector<1x20xf32>
    %c6_35 = arith.constant 6 : index
    %c0_36 = arith.constant 0 : index
    %66 = vector.load %arg12[%c6_35, %c0_36] : memref<16x20xf32, #tpu.memory_space<vmem>>, vector<1x20xf32>
    tpu.vector_store %arg12[%c6_35, %c0_36], %65 {strides = array<i32>} : memref<16x20xf32, #tpu.memory_space<vmem>>, vector<1x20xf32>,
    %c7_i32 = arith.constant 7 : i32
    %67 = arith.addi %10, %c7_i32 : i32
    %68 = arith.index_cast %67 : i32 to index
    %69 = memref.load %arg1[%68] : memref<16xi32, #tpu.memory_space<smem>>
    %70 = arith.index_cast %69 : i32 to index
    %c0_37 = arith.constant 0 : index
    %71 = vector.load %arg2[%70, %c0_37] : memref<20x20xf32, #tpu.memory_space<vmem>>, vector<1x20xf32>
    %c7 = arith.constant 7 : index
    %c0_38 = arith.constant 0 : index
    %72 = vector.load %arg3[%c7, %c0_38] : memref<8x20xf32, #tpu.memory_space<vmem>>, vector<1x20xf32>
    %73 = arith.addf %71, %72 : vector<1x20xf32>
    %c7_39 = arith.constant 7 : index
    %c0_40 = arith.constant 0 : index
    %74 = vector.load %arg12[%c7_39, %c0_40] : memref<16x20xf32, #tpu.memory_space<vmem>>, vector<1x20xf32>
    tpu.vector_store %arg12[%c7_39, %c0_40], %73 {strides = array<i32>} : memref<16x20xf32, #tpu.memory_space<vmem>>, vector<1x20xf32>,
    %c8_i32_41 = arith.constant 8 : i32
    %75 = arith.addi %10, %c8_i32_41 : i32
    %76 = arith.index_cast %75 : i32 to index
    %77 = memref.load %arg1[%76] : memref<16xi32, #tpu.memory_space<smem>>
    %78 = arith.index_cast %77 : i32 to index
    %c0_42 = arith.constant 0 : index
    %79 = vector.load %arg2[%78, %c0_42] : memref<20x20xf32, #tpu.memory_space<vmem>>, vector<1x20xf32>
    %c0_43 = arith.constant 0 : index
    %c0_44 = arith.constant 0 : index
    %80 = vector.load %arg3[%c0_43, %c0_44] : memref<8x20xf32, #tpu.memory_space<vmem>>, vector<1x20xf32>
    %81 = arith.addf %79, %80 : vector<1x20xf32>
    %c8 = arith.constant 8 : index
    %c0_45 = arith.constant 0 : index
    %82 = vector.load %arg12[%c8, %c0_45] : memref<16x20xf32, #tpu.memory_space<vmem>>, vector<1x20xf32>
    tpu.vector_store %arg12[%c8, %c0_45], %81 {strides = array<i32>} : memref<16x20xf32, #tpu.memory_space<vmem>>, vector<1x20xf32>,
    %c9_i32 = arith.constant 9 : i32
    %83 = arith.addi %10, %c9_i32 : i32
    %84 = arith.index_cast %83 : i32 to index
    %85 = memref.load %arg1[%84] : memref<16xi32, #tpu.memory_space<smem>>
    %86 = arith.index_cast %85 : i32 to index
    %c0_46 = arith.constant 0 : index
    %87 = vector.load %arg2[%86, %c0_46] : memref<20x20xf32, #tpu.memory_space<vmem>>, vector<1x20xf32>
    %c1_47 = arith.constant 1 : index
    %c0_48 = arith.constant 0 : index
    %88 = vector.load %arg3[%c1_47, %c0_48] : memref<8x20xf32, #tpu.memory_space<vmem>>, vector<1x20xf32>
    %89 = arith.addf %87, %88 : vector<1x20xf32>
    %c9 = arith.constant 9 : index
    %c0_49 = arith.constant 0 : index
    %90 = vector.load %arg12[%c9, %c0_49] : memref<16x20xf32, #tpu.memory_space<vmem>>, vector<1x20xf32>
    tpu.vector_store %arg12[%c9, %c0_49], %89 {strides = array<i32>} : memref<16x20xf32, #tpu.memory_space<vmem>>, vector<1x20xf32>,
    %c10_i32 = arith.constant 10 : i32
    %91 = arith.addi %10, %c10_i32 : i32
    %92 = arith.index_cast %91 : i32 to index
    %93 = memref.load %arg1[%92] : memref<16xi32, #tpu.memory_space<smem>>
    %94 = arith.index_cast %93 : i32 to index
    %c0_50 = arith.constant 0 : index
    %95 = vector.load %arg2[%94, %c0_50] : memref<20x20xf32, #tpu.memory_space<vmem>>, vector<1x20xf32>
    %c2_51 = arith.constant 2 : index
    %c0_52 = arith.constant 0 : index
    %96 = vector.load %arg3[%c2_51, %c0_52] : memref<8x20xf32, #tpu.memory_space<vmem>>, vector<1x20xf32>
    %97 = arith.addf %95, %96 : vector<1x20xf32>
    %c10 = arith.constant 10 : index
    %c0_53 = arith.constant 0 : index
    %98 = vector.load %arg12[%c10, %c0_53] : memref<16x20xf32, #tpu.memory_space<vmem>>, vector<1x20xf32>
    tpu.vector_store %arg12[%c10, %c0_53], %97 {strides = array<i32>} : memref<16x20xf32, #tpu.memory_space<vmem>>, vector<1x20xf32>,
    %c11_i32 = arith.constant 11 : i32
    %99 = arith.addi %10, %c11_i32 : i32
    %100 = arith.index_cast %99 : i32 to index
    %101 = memref.load %arg1[%100] : memref<16xi32, #tpu.memory_space<smem>>
    %102 = arith.index_cast %101 : i32 to index
    %c0_54 = arith.constant 0 : index
    %103 = vector.load %arg2[%102, %c0_54] : memref<20x20xf32, #tpu.memory_space<vmem>>, vector<1x20xf32>
    %c3_55 = arith.constant 3 : index
    %c0_56 = arith.constant 0 : index
    %104 = vector.load %arg3[%c3_55, %c0_56] : memref<8x20xf32, #tpu.memory_space<vmem>>, vector<1x20xf32>
    %105 = arith.addf %103, %104 : vector<1x20xf32>
    %c11 = arith.constant 11 : index
    %c0_57 = arith.constant 0 : index
    %106 = vector.load %arg12[%c11, %c0_57] : memref<16x20xf32, #tpu.memory_space<vmem>>, vector<1x20xf32>
    tpu.vector_store %arg12[%c11, %c0_57], %105 {strides = array<i32>} : memref<16x20xf32, #tpu.memory_space<vmem>>, vector<1x20xf32>,
    %c12_i32 = arith.constant 12 : i32
    %107 = arith.addi %10, %c12_i32 : i32
    %108 = arith.index_cast %107 : i32 to index
    %109 = memref.load %arg1[%108] : memref<16xi32, #tpu.memory_space<smem>>
    %110 = arith.index_cast %109 : i32 to index
    %c0_58 = arith.constant 0 : index
    %111 = vector.load %arg2[%110, %c0_58] : memref<20x20xf32, #tpu.memory_space<vmem>>, vector<1x20xf32>
    %c4_59 = arith.constant 4 : index
    %c0_60 = arith.constant 0 : index
    %112 = vector.load %arg3[%c4_59, %c0_60] : memref<8x20xf32, #tpu.memory_space<vmem>>, vector<1x20xf32>
    %113 = arith.addf %111, %112 : vector<1x20xf32>
    %c12 = arith.constant 12 : index
    %c0_61 = arith.constant 0 : index
    %114 = vector.load %arg12[%c12, %c0_61] : memref<16x20xf32, #tpu.memory_space<vmem>>, vector<1x20xf32>
    tpu.vector_store %arg12[%c12, %c0_61], %113 {strides = array<i32>} : memref<16x20xf32, #tpu.memory_space<vmem>>, vector<1x20xf32>,
    %c13_i32 = arith.constant 13 : i32
    %115 = arith.addi %10, %c13_i32 : i32
    %116 = arith.index_cast %115 : i32 to index
    %117 = memref.load %arg1[%116] : memref<16xi32, #tpu.memory_space<smem>>
    %118 = arith.index_cast %117 : i32 to index
    %c0_62 = arith.constant 0 : index
    %119 = vector.load %arg2[%118, %c0_62] : memref<20x20xf32, #tpu.memory_space<vmem>>, vector<1x20xf32>
    %c5_63 = arith.constant 5 : index
    %c0_64 = arith.constant 0 : index
    %120 = vector.load %arg3[%c5_63, %c0_64] : memref<8x20xf32, #tpu.memory_space<vmem>>, vector<1x20xf32>
    %121 = arith.addf %119, %120 : vector<1x20xf32>
    %c13 = arith.constant 13 : index
    %c0_65 = arith.constant 0 : index
    %122 = vector.load %arg12[%c13, %c0_65] : memref<16x20xf32, #tpu.memory_space<vmem>>, vector<1x20xf32>
    tpu.vector_store %arg12[%c13, %c0_65], %121 {strides = array<i32>} : memref<16x20xf32, #tpu.memory_space<vmem>>, vector<1x20xf32>,
    %c14_i32 = arith.constant 14 : i32
    %123 = arith.addi %10, %c14_i32 : i32
    %124 = arith.index_cast %123 : i32 to index
    %125 = memref.load %arg1[%124] : memref<16xi32, #tpu.memory_space<smem>>
    %126 = arith.index_cast %125 : i32 to index
    %c0_66 = arith.constant 0 : index
    %127 = vector.load %arg2[%126, %c0_66] : memref<20x20xf32, #tpu.memory_space<vmem>>, vector<1x20xf32>
    %c6_67 = arith.constant 6 : index
    %c0_68 = arith.constant 0 : index
    %128 = vector.load %arg3[%c6_67, %c0_68] : memref<8x20xf32, #tpu.memory_space<vmem>>, vector<1x20xf32>
    %129 = arith.addf %127, %128 : vector<1x20xf32>
    %c14 = arith.constant 14 : index
    %c0_69 = arith.constant 0 : index
    %130 = vector.load %arg12[%c14, %c0_69] : memref<16x20xf32, #tpu.memory_space<vmem>>, vector<1x20xf32>
    tpu.vector_store %arg12[%c14, %c0_69], %129 {strides = array<i32>} : memref<16x20xf32, #tpu.memory_space<vmem>>, vector<1x20xf32>,
    %c15_i32 = arith.constant 15 : i32
    %131 = arith.addi %10, %c15_i32 : i32
    %132 = arith.index_cast %131 : i32 to index
    %133 = memref.load %arg1[%132] : memref<16xi32, #tpu.memory_space<smem>>
    %134 = arith.index_cast %133 : i32 to index
    %c0_70 = arith.constant 0 : index
    %135 = vector.load %arg2[%134, %c0_70] : memref<20x20xf32, #tpu.memory_space<vmem>>, vector<1x20xf32>
    %c7_71 = arith.constant 7 : index
    %c0_72 = arith.constant 0 : index
    %136 = vector.load %arg3[%c7_71, %c0_72] : memref<8x20xf32, #tpu.memory_space<vmem>>, vector<1x20xf32>
    %137 = arith.addf %135, %136 : vector<1x20xf32>
    %c15 = arith.constant 15 : index
    %c0_73 = arith.constant 0 : index
    %138 = vector.load %arg12[%c15, %c0_73] : memref<16x20xf32, #tpu.memory_space<vmem>>, vector<1x20xf32>
    tpu.vector_store %arg12[%c15, %c0_73], %137 {strides = array<i32>} : memref<16x20xf32, #tpu.memory_space<vmem>>, vector<1x20xf32>,
    %c0_74 = arith.constant 0 : index
    %c0_75 = arith.constant 0 : index
    %139 = vector.load %arg12[%c0_74, %c0_75] : memref<16x20xf32, #tpu.memory_space<vmem>>, vector<16x20xf32>
    %140 = arith.truncf %139 : vector<16x20xf32> to vector<16x20xbf16>
    %cst = arith.constant dense<0.000000e+00> : vector<16x80xf32>
    %141 = tpu.matmul %140, %1, %cst {dimension_numbers = #tpu.dot_dimension_numbers<[1], [0], [0], [1], [0, 0, 1, 1], [], []>} : vector<16x20xbf16>, vector<20x80xbf16>, vector<16x80xf32> -> vector<16x80xf32>
    %c0_76 = arith.constant 0 : index
    %c0_77 = arith.constant 0 : index
    %142 = vector.load %arg6[%c0_76, %c0_77] : memref<1x80xf32, #tpu.memory_space<vmem>>, vector<1x80xf32>
    %143 = vector.broadcast %142 : vector<1x80xf32> to vector<16x80xf32>
    %144 = arith.addf %141, %143 : vector<16x80xf32>
    %145 = vector.shape_cast %144 : vector<16x80xf32> to vector<2x8x80xf32>
    %cst_78 = arith.constant 0.000000e+00 : f32
    %146 = vector.broadcast %cst_78 : f32 to vector<2x20xf32>
    %cst_79 = arith.constant 0.000000e+00 : f32
    %147 = vector.broadcast %cst_79 : f32 to vector<2x20xf32>
    %cst_80 = arith.constant 0.000000e+00 : f32
    %148 = vector.broadcast %cst_80 : f32 to vector<2x20xf32>
    %cst_81 = arith.constant 0.000000e+00 : f32
    %149 = vector.broadcast %cst_81 : f32 to vector<2x20xf32>
    %150 = vector.extract_strided_slice %145 {offsets = [0, 0, 0], sizes = [2, 1, 80], strides = [1, 1, 1]} : vector<2x8x80xf32> to vector<2x1x80xf32>
    %151 = vector.shape_cast %150 : vector<2x1x80xf32> to vector<2x80xf32>
    %152 = arith.truncf %146 : vector<2x20xf32> to vector<2x20xbf16>
    %cst_82 = arith.constant dense<0.000000e+00> : vector<2x80xf32>
    %153 = tpu.matmul %152, %3, %cst_82 {dimension_numbers = #tpu.dot_dimension_numbers<[1], [0], [0], [1], [0, 0, 1, 1], [], []>} : vector<2x20xbf16>, vector<20x80xbf16>, vector<2x80xf32> -> vector<2x80xf32>
    %154 = arith.addf %151, %153 : vector<2x80xf32>
    %155 = vector.extract_strided_slice %154 {offsets = [0, 0], sizes = [2, 60], strides = [1, 1]} : vector<2x80xf32> to vector<2x60xf32>
    %156 = arith.negf %155 : vector<2x60xf32>
    %157 = math.exp %156 : vector<2x60xf32>
    %cst_83 = arith.constant 1.000000e+00 : f32
    %158 = vector.broadcast %cst_83 : f32 to vector<2x60xf32>
    %159 = arith.addf %158, %157 : vector<2x60xf32>
    %160 = arith.divf %158, %159 : vector<2x60xf32>
    %161 = vector.extract_strided_slice %154 {offsets = [0, 60], sizes = [2, 20], strides = [1, 1]} : vector<2x80xf32> to vector<2x20xf32>
    %162 = math.tanh %161 : vector<2x20xf32>
    %163 = vector.extract_strided_slice %160 {offsets = [0, 0], sizes = [2, 20], strides = [1, 1]} : vector<2x60xf32> to vector<2x20xf32>
    %164 = vector.extract_strided_slice %160 {offsets = [0, 20], sizes = [2, 20], strides = [1, 1]} : vector<2x60xf32> to vector<2x20xf32>
    %165 = vector.extract_strided_slice %160 {offsets = [0, 40], sizes = [2, 20], strides = [1, 1]} : vector<2x60xf32> to vector<2x20xf32>
    %166 = arith.mulf %164, %147 : vector<2x20xf32>
    %167 = arith.mulf %163, %162 : vector<2x20xf32>
    %168 = arith.addf %166, %167 : vector<2x20xf32>
    %169 = math.tanh %168 : vector<2x20xf32>
    %170 = arith.mulf %165, %169 : vector<2x20xf32>
    %171 = tpu.concatenate %170, %148 in 1 : vector<2x20xf32>, vector<2x20xf32> -> vector<2x40xf32>
    %172 = arith.truncf %171 : vector<2x40xf32> to vector<2x40xbf16>
    %cst_84 = arith.constant dense<0.000000e+00> : vector<2x80xf32>
    %173 = tpu.matmul %172, %5, %cst_84 {dimension_numbers = #tpu.dot_dimension_numbers<[1], [0], [0], [1], [0, 0, 1, 1], [], []>} : vector<2x40xbf16>, vector<40x80xbf16>, vector<2x80xf32> -> vector<2x80xf32>
    %174 = arith.addf %173, %8 : vector<2x80xf32>
    %175 = vector.extract_strided_slice %174 {offsets = [0, 0], sizes = [2, 60], strides = [1, 1]} : vector<2x80xf32> to vector<2x60xf32>
    %176 = arith.negf %175 : vector<2x60xf32>
    %177 = math.exp %176 : vector<2x60xf32>
    %cst_85 = arith.constant 1.000000e+00 : f32
    %178 = vector.broadcast %cst_85 : f32 to vector<2x60xf32>
    %179 = arith.addf %178, %177 : vector<2x60xf32>
    %180 = arith.divf %178, %179 : vector<2x60xf32>
    %181 = vector.extract_strided_slice %174 {offsets = [0, 60], sizes = [2, 20], strides = [1, 1]} : vector<2x80xf32> to vector<2x20xf32>
    %182 = math.tanh %181 : vector<2x20xf32>
    %183 = vector.extract_strided_slice %180 {offsets = [0, 0], sizes = [2, 20], strides = [1, 1]} : vector<2x60xf32> to vector<2x20xf32>
    %184 = vector.extract_strided_slice %180 {offsets = [0, 20], sizes = [2, 20], strides = [1, 1]} : vector<2x60xf32> to vector<2x20xf32>
    %185 = vector.extract_strided_slice %180 {offsets = [0, 40], sizes = [2, 20], strides = [1, 1]} : vector<2x60xf32> to vector<2x20xf32>
    %186 = arith.mulf %184, %149 : vector<2x20xf32>
    %187 = arith.mulf %183, %182 : vector<2x20xf32>
    %188 = arith.addf %186, %187 : vector<2x20xf32>
    %189 = math.tanh %188 : vector<2x20xf32>
    %190 = arith.mulf %185, %189 : vector<2x20xf32>
    %191 = vector.extract_strided_slice %145 {offsets = [0, 1, 0], sizes = [2, 1, 80], strides = [1, 1, 1]} : vector<2x8x80xf32> to vector<2x1x80xf32>
    %192 = vector.shape_cast %191 : vector<2x1x80xf32> to vector<2x80xf32>
    %193 = arith.truncf %170 : vector<2x20xf32> to vector<2x20xbf16>
    %cst_86 = arith.constant dense<0.000000e+00> : vector<2x80xf32>
    %194 = tpu.matmul %193, %3, %cst_86 {dimension_numbers = #tpu.dot_dimension_numbers<[1], [0], [0], [1], [0, 0, 1, 1], [], []>} : vector<2x20xbf16>, vector<20x80xbf16>, vector<2x80xf32> -> vector<2x80xf32>
    %195 = arith.addf %192, %194 : vector<2x80xf32>
    %196 = vector.extract_strided_slice %195 {offsets = [0, 0], sizes = [2, 60], strides = [1, 1]} : vector<2x80xf32> to vector<2x60xf32>
    %197 = arith.negf %196 : vector<2x60xf32>
    %198 = math.exp %197 : vector<2x60xf32>
    %cst_87 = arith.constant 1.000000e+00 : f32
    %199 = vector.broadcast %cst_87 : f32 to vector<2x60xf32>
    %200 = arith.addf %199, %198 : vector<2x60xf32>
    %201 = arith.divf %199, %200 : vector<2x60xf32>
    %202 = vector.extract_strided_slice %195 {offsets = [0, 60], sizes = [2, 20], strides = [1, 1]} : vector<2x80xf32> to vector<2x20xf32>
    %203 = math.tanh %202 : vector<2x20xf32>
    %204 = vector.extract_strided_slice %201 {offsets = [0, 0], sizes = [2, 20], strides = [1, 1]} : vector<2x60xf32> to vector<2x20xf32>
    %205 = vector.extract_strided_slice %201 {offsets = [0, 20], sizes = [2, 20], strides = [1, 1]} : vector<2x60xf32> to vector<2x20xf32>
    %206 = vector.extract_strided_slice %201 {offsets = [0, 40], sizes = [2, 20], strides = [1, 1]} : vector<2x60xf32> to vector<2x20xf32>
    %207 = arith.mulf %205, %168 : vector<2x20xf32>
    %208 = arith.mulf %204, %203 : vector<2x20xf32>
    %209 = arith.addf %207, %208 : vector<2x20xf32>
    %210 = math.tanh %209 : vector<2x20xf32>
    %211 = arith.mulf %206, %210 : vector<2x20xf32>
    %212 = tpu.concatenate %211, %190 in 1 : vector<2x20xf32>, vector<2x20xf32> -> vector<2x40xf32>
    %213 = arith.truncf %212 : vector<2x40xf32> to vector<2x40xbf16>
    %cst_88 = arith.constant dense<0.000000e+00> : vector<2x80xf32>
    %214 = tpu.matmul %213, %5, %cst_88 {dimension_numbers = #tpu.dot_dimension_numbers<[1], [0], [0], [1], [0, 0, 1, 1], [], []>} : vector<2x40xbf16>, vector<40x80xbf16>, vector<2x80xf32> -> vector<2x80xf32>
    %215 = arith.addf %214, %8 : vector<2x80xf32>
    %216 = vector.extract_strided_slice %215 {offsets = [0, 0], sizes = [2, 60], strides = [1, 1]} : vector<2x80xf32> to vector<2x60xf32>
    %217 = arith.negf %216 : vector<2x60xf32>
    %218 = math.exp %217 : vector<2x60xf32>
    %cst_89 = arith.constant 1.000000e+00 : f32
    %219 = vector.broadcast %cst_89 : f32 to vector<2x60xf32>
    %220 = arith.addf %219, %218 : vector<2x60xf32>
    %221 = arith.divf %219, %220 : vector<2x60xf32>
    %222 = vector.extract_strided_slice %215 {offsets = [0, 60], sizes = [2, 20], strides = [1, 1]} : vector<2x80xf32> to vector<2x20xf32>
    %223 = math.tanh %222 : vector<2x20xf32>
    %224 = vector.extract_strided_slice %221 {offsets = [0, 0], sizes = [2, 20], strides = [1, 1]} : vector<2x60xf32> to vector<2x20xf32>
    %225 = vector.extract_strided_slice %221 {offsets = [0, 20], sizes = [2, 20], strides = [1, 1]} : vector<2x60xf32> to vector<2x20xf32>
    %226 = vector.extract_strided_slice %221 {offsets = [0, 40], sizes = [2, 20], strides = [1, 1]} : vector<2x60xf32> to vector<2x20xf32>
    %227 = arith.mulf %225, %188 : vector<2x20xf32>
    %228 = arith.mulf %224, %223 : vector<2x20xf32>
    %229 = arith.addf %227, %228 : vector<2x20xf32>
    %230 = math.tanh %229 : vector<2x20xf32>
    %231 = arith.mulf %226, %230 : vector<2x20xf32>
    %232 = vector.extract_strided_slice %145 {offsets = [0, 2, 0], sizes = [2, 1, 80], strides = [1, 1, 1]} : vector<2x8x80xf32> to vector<2x1x80xf32>
    %233 = vector.shape_cast %232 : vector<2x1x80xf32> to vector<2x80xf32>
    %234 = arith.truncf %211 : vector<2x20xf32> to vector<2x20xbf16>
    %cst_90 = arith.constant dense<0.000000e+00> : vector<2x80xf32>
    %235 = tpu.matmul %234, %3, %cst_90 {dimension_numbers = #tpu.dot_dimension_numbers<[1], [0], [0], [1], [0, 0, 1, 1], [], []>} : vector<2x20xbf16>, vector<20x80xbf16>, vector<2x80xf32> -> vector<2x80xf32>
    %236 = arith.addf %233, %235 : vector<2x80xf32>
    %237 = vector.extract_strided_slice %236 {offsets = [0, 0], sizes = [2, 60], strides = [1, 1]} : vector<2x80xf32> to vector<2x60xf32>
    %238 = arith.negf %237 : vector<2x60xf32>
    %239 = math.exp %238 : vector<2x60xf32>
    %cst_91 = arith.constant 1.000000e+00 : f32
    %240 = vector.broadcast %cst_91 : f32 to vector<2x60xf32>
    %241 = arith.addf %240, %239 : vector<2x60xf32>
    %242 = arith.divf %240, %241 : vector<2x60xf32>
    %243 = vector.extract_strided_slice %236 {offsets = [0, 60], sizes = [2, 20], strides = [1, 1]} : vector<2x80xf32> to vector<2x20xf32>
    %244 = math.tanh %243 : vector<2x20xf32>
    %245 = vector.extract_strided_slice %242 {offsets = [0, 0], sizes = [2, 20], strides = [1, 1]} : vector<2x60xf32> to vector<2x20xf32>
    %246 = vector.extract_strided_slice %242 {offsets = [0, 20], sizes = [2, 20], strides = [1, 1]} : vector<2x60xf32> to vector<2x20xf32>
    %247 = vector.extract_strided_slice %242 {offsets = [0, 40], sizes = [2, 20], strides = [1, 1]} : vector<2x60xf32> to vector<2x20xf32>
    %248 = arith.mulf %246, %209 : vector<2x20xf32>
    %249 = arith.mulf %245, %244 : vector<2x20xf32>
    %250 = arith.addf %248, %249 : vector<2x20xf32>
    %251 = math.tanh %250 : vector<2x20xf32>
    %252 = arith.mulf %247, %251 : vector<2x20xf32>
    %253 = tpu.concatenate %252, %231 in 1 : vector<2x20xf32>, vector<2x20xf32> -> vector<2x40xf32>
    %254 = arith.truncf %253 : vector<2x40xf32> to vector<2x40xbf16>
    %cst_92 = arith.constant dense<0.000000e+00> : vector<2x80xf32>
    %255 = tpu.matmul %254, %5, %cst_92 {dimension_numbers = #tpu.dot_dimension_numbers<[1], [0], [0], [1], [0, 0, 1, 1], [], []>} : vector<2x40xbf16>, vector<40x80xbf16>, vector<2x80xf32> -> vector<2x80xf32>
    %256 = arith.addf %255, %8 : vector<2x80xf32>
    %257 = vector.extract_strided_slice %256 {offsets = [0, 0], sizes = [2, 60], strides = [1, 1]} : vector<2x80xf32> to vector<2x60xf32>
    %258 = arith.negf %257 : vector<2x60xf32>
    %259 = math.exp %258 : vector<2x60xf32>
    %cst_93 = arith.constant 1.000000e+00 : f32
    %260 = vector.broadcast %cst_93 : f32 to vector<2x60xf32>
    %261 = arith.addf %260, %259 : vector<2x60xf32>
    %262 = arith.divf %260, %261 : vector<2x60xf32>
    %263 = vector.extract_strided_slice %256 {offsets = [0, 60], sizes = [2, 20], strides = [1, 1]} : vector<2x80xf32> to vector<2x20xf32>
    %264 = math.tanh %263 : vector<2x20xf32>
    %265 = vector.extract_strided_slice %262 {offsets = [0, 0], sizes = [2, 20], strides = [1, 1]} : vector<2x60xf32> to vector<2x20xf32>
    %266 = vector.extract_strided_slice %262 {offsets = [0, 20], sizes = [2, 20], strides = [1, 1]} : vector<2x60xf32> to vector<2x20xf32>
    %267 = vector.extract_strided_slice %262 {offsets = [0, 40], sizes = [2, 20], strides = [1, 1]} : vector<2x60xf32> to vector<2x20xf32>
    %268 = arith.mulf %266, %229 : vector<2x20xf32>
    %269 = arith.mulf %265, %264 : vector<2x20xf32>
    %270 = arith.addf %268, %269 : vector<2x20xf32>
    %271 = math.tanh %270 : vector<2x20xf32>
    %272 = arith.mulf %267, %271 : vector<2x20xf32>
    %273 = vector.extract_strided_slice %145 {offsets = [0, 3, 0], sizes = [2, 1, 80], strides = [1, 1, 1]} : vector<2x8x80xf32> to vector<2x1x80xf32>
    %274 = vector.shape_cast %273 : vector<2x1x80xf32> to vector<2x80xf32>
    %275 = arith.truncf %252 : vector<2x20xf32> to vector<2x20xbf16>
    %cst_94 = arith.constant dense<0.000000e+00> : vector<2x80xf32>
    %276 = tpu.matmul %275, %3, %cst_94 {dimension_numbers = #tpu.dot_dimension_numbers<[1], [0], [0], [1], [0, 0, 1, 1], [], []>} : vector<2x20xbf16>, vector<20x80xbf16>, vector<2x80xf32> -> vector<2x80xf32>
    %277 = arith.addf %274, %276 : vector<2x80xf32>
    %278 = vector.extract_strided_slice %277 {offsets = [0, 0], sizes = [2, 60], strides = [1, 1]} : vector<2x80xf32> to vector<2x60xf32>
    %279 = arith.negf %278 : vector<2x60xf32>
    %280 = math.exp %279 : vector<2x60xf32>
    %cst_95 = arith.constant 1.000000e+00 : f32
    %281 = vector.broadcast %cst_95 : f32 to vector<2x60xf32>
    %282 = arith.addf %281, %280 : vector<2x60xf32>
    %283 = arith.divf %281, %282 : vector<2x60xf32>
    %284 = vector.extract_strided_slice %277 {offsets = [0, 60], sizes = [2, 20], strides = [1, 1]} : vector<2x80xf32> to vector<2x20xf32>
    %285 = math.tanh %284 : vector<2x20xf32>
    %286 = vector.extract_strided_slice %283 {offsets = [0, 0], sizes = [2, 20], strides = [1, 1]} : vector<2x60xf32> to vector<2x20xf32>
    %287 = vector.extract_strided_slice %283 {offsets = [0, 20], sizes = [2, 20], strides = [1, 1]} : vector<2x60xf32> to vector<2x20xf32>
    %288 = vector.extract_strided_slice %283 {offsets = [0, 40], sizes = [2, 20], strides = [1, 1]} : vector<2x60xf32> to vector<2x20xf32>
    %289 = arith.mulf %287, %250 : vector<2x20xf32>
    %290 = arith.mulf %286, %285 : vector<2x20xf32>
    %291 = arith.addf %289, %290 : vector<2x20xf32>
    %292 = math.tanh %291 : vector<2x20xf32>
    %293 = arith.mulf %288, %292 : vector<2x20xf32>
    %294 = tpu.concatenate %293, %272 in 1 : vector<2x20xf32>, vector<2x20xf32> -> vector<2x40xf32>
    %295 = arith.truncf %294 : vector<2x40xf32> to vector<2x40xbf16>
    %cst_96 = arith.constant dense<0.000000e+00> : vector<2x80xf32>
    %296 = tpu.matmul %295, %5, %cst_96 {dimension_numbers = #tpu.dot_dimension_numbers<[1], [0], [0], [1], [0, 0, 1, 1], [], []>} : vector<2x40xbf16>, vector<40x80xbf16>, vector<2x80xf32> -> vector<2x80xf32>
    %297 = arith.addf %296, %8 : vector<2x80xf32>
    %298 = vector.extract_strided_slice %297 {offsets = [0, 0], sizes = [2, 60], strides = [1, 1]} : vector<2x80xf32> to vector<2x60xf32>
    %299 = arith.negf %298 : vector<2x60xf32>
    %300 = math.exp %299 : vector<2x60xf32>
    %cst_97 = arith.constant 1.000000e+00 : f32
    %301 = vector.broadcast %cst_97 : f32 to vector<2x60xf32>
    %302 = arith.addf %301, %300 : vector<2x60xf32>
    %303 = arith.divf %301, %302 : vector<2x60xf32>
    %304 = vector.extract_strided_slice %297 {offsets = [0, 60], sizes = [2, 20], strides = [1, 1]} : vector<2x80xf32> to vector<2x20xf32>
    %305 = math.tanh %304 : vector<2x20xf32>
    %306 = vector.extract_strided_slice %303 {offsets = [0, 0], sizes = [2, 20], strides = [1, 1]} : vector<2x60xf32> to vector<2x20xf32>
    %307 = vector.extract_strided_slice %303 {offsets = [0, 20], sizes = [2, 20], strides = [1, 1]} : vector<2x60xf32> to vector<2x20xf32>
    %308 = vector.extract_strided_slice %303 {offsets = [0, 40], sizes = [2, 20], strides = [1, 1]} : vector<2x60xf32> to vector<2x20xf32>
    %309 = arith.mulf %307, %270 : vector<2x20xf32>
    %310 = arith.mulf %306, %305 : vector<2x20xf32>
    %311 = arith.addf %309, %310 : vector<2x20xf32>
    %312 = math.tanh %311 : vector<2x20xf32>
    %313 = arith.mulf %308, %312 : vector<2x20xf32>
    %314 = vector.extract_strided_slice %145 {offsets = [0, 4, 0], sizes = [2, 1, 80], strides = [1, 1, 1]} : vector<2x8x80xf32> to vector<2x1x80xf32>
    %315 = vector.shape_cast %314 : vector<2x1x80xf32> to vector<2x80xf32>
    %316 = arith.truncf %293 : vector<2x20xf32> to vector<2x20xbf16>
    %cst_98 = arith.constant dense<0.000000e+00> : vector<2x80xf32>
    %317 = tpu.matmul %316, %3, %cst_98 {dimension_numbers = #tpu.dot_dimension_numbers<[1], [0], [0], [1], [0, 0, 1, 1], [], []>} : vector<2x20xbf16>, vector<20x80xbf16>, vector<2x80xf32> -> vector<2x80xf32>
    %318 = arith.addf %315, %317 : vector<2x80xf32>
    %319 = vector.extract_strided_slice %318 {offsets = [0, 0], sizes = [2, 60], strides = [1, 1]} : vector<2x80xf32> to vector<2x60xf32>
    %320 = arith.negf %319 : vector<2x60xf32>
    %321 = math.exp %320 : vector<2x60xf32>
    %cst_99 = arith.constant 1.000000e+00 : f32
    %322 = vector.broadcast %cst_99 : f32 to vector<2x60xf32>
    %323 = arith.addf %322, %321 : vector<2x60xf32>
    %324 = arith.divf %322, %323 : vector<2x60xf32>
    %325 = vector.extract_strided_slice %318 {offsets = [0, 60], sizes = [2, 20], strides = [1, 1]} : vector<2x80xf32> to vector<2x20xf32>
    %326 = math.tanh %325 : vector<2x20xf32>
    %327 = vector.extract_strided_slice %324 {offsets = [0, 0], sizes = [2, 20], strides = [1, 1]} : vector<2x60xf32> to vector<2x20xf32>
    %328 = vector.extract_strided_slice %324 {offsets = [0, 20], sizes = [2, 20], strides = [1, 1]} : vector<2x60xf32> to vector<2x20xf32>
    %329 = vector.extract_strided_slice %324 {offsets = [0, 40], sizes = [2, 20], strides = [1, 1]} : vector<2x60xf32> to vector<2x20xf32>
    %330 = arith.mulf %328, %291 : vector<2x20xf32>
    %331 = arith.mulf %327, %326 : vector<2x20xf32>
    %332 = arith.addf %330, %331 : vector<2x20xf32>
    %333 = math.tanh %332 : vector<2x20xf32>
    %334 = arith.mulf %329, %333 : vector<2x20xf32>
    %335 = tpu.concatenate %334, %313 in 1 : vector<2x20xf32>, vector<2x20xf32> -> vector<2x40xf32>
    %336 = arith.truncf %335 : vector<2x40xf32> to vector<2x40xbf16>
    %cst_100 = arith.constant dense<0.000000e+00> : vector<2x80xf32>
    %337 = tpu.matmul %336, %5, %cst_100 {dimension_numbers = #tpu.dot_dimension_numbers<[1], [0], [0], [1], [0, 0, 1, 1], [], []>} : vector<2x40xbf16>, vector<40x80xbf16>, vector<2x80xf32> -> vector<2x80xf32>
    %338 = arith.addf %337, %8 : vector<2x80xf32>
    %339 = vector.extract_strided_slice %338 {offsets = [0, 0], sizes = [2, 60], strides = [1, 1]} : vector<2x80xf32> to vector<2x60xf32>
    %340 = arith.negf %339 : vector<2x60xf32>
    %341 = math.exp %340 : vector<2x60xf32>
    %cst_101 = arith.constant 1.000000e+00 : f32
    %342 = vector.broadcast %cst_101 : f32 to vector<2x60xf32>
    %343 = arith.addf %342, %341 : vector<2x60xf32>
    %344 = arith.divf %342, %343 : vector<2x60xf32>
    %345 = vector.extract_strided_slice %338 {offsets = [0, 60], sizes = [2, 20], strides = [1, 1]} : vector<2x80xf32> to vector<2x20xf32>
    %346 = math.tanh %345 : vector<2x20xf32>
    %347 = vector.extract_strided_slice %344 {offsets = [0, 0], sizes = [2, 20], strides = [1, 1]} : vector<2x60xf32> to vector<2x20xf32>
    %348 = vector.extract_strided_slice %344 {offsets = [0, 20], sizes = [2, 20], strides = [1, 1]} : vector<2x60xf32> to vector<2x20xf32>
    %349 = vector.extract_strided_slice %344 {offsets = [0, 40], sizes = [2, 20], strides = [1, 1]} : vector<2x60xf32> to vector<2x20xf32>
    %350 = arith.mulf %348, %311 : vector<2x20xf32>
    %351 = arith.mulf %347, %346 : vector<2x20xf32>
    %352 = arith.addf %350, %351 : vector<2x20xf32>
    %353 = math.tanh %352 : vector<2x20xf32>
    %354 = arith.mulf %349, %353 : vector<2x20xf32>
    %355 = vector.extract_strided_slice %145 {offsets = [0, 5, 0], sizes = [2, 1, 80], strides = [1, 1, 1]} : vector<2x8x80xf32> to vector<2x1x80xf32>
    %356 = vector.shape_cast %355 : vector<2x1x80xf32> to vector<2x80xf32>
    %357 = arith.truncf %334 : vector<2x20xf32> to vector<2x20xbf16>
    %cst_102 = arith.constant dense<0.000000e+00> : vector<2x80xf32>
    %358 = tpu.matmul %357, %3, %cst_102 {dimension_numbers = #tpu.dot_dimension_numbers<[1], [0], [0], [1], [0, 0, 1, 1], [], []>} : vector<2x20xbf16>, vector<20x80xbf16>, vector<2x80xf32> -> vector<2x80xf32>
    %359 = arith.addf %356, %358 : vector<2x80xf32>
    %360 = vector.extract_strided_slice %359 {offsets = [0, 0], sizes = [2, 60], strides = [1, 1]} : vector<2x80xf32> to vector<2x60xf32>
    %361 = arith.negf %360 : vector<2x60xf32>
    %362 = math.exp %361 : vector<2x60xf32>
    %cst_103 = arith.constant 1.000000e+00 : f32
    %363 = vector.broadcast %cst_103 : f32 to vector<2x60xf32>
    %364 = arith.addf %363, %362 : vector<2x60xf32>
    %365 = arith.divf %363, %364 : vector<2x60xf32>
    %366 = vector.extract_strided_slice %359 {offsets = [0, 60], sizes = [2, 20], strides = [1, 1]} : vector<2x80xf32> to vector<2x20xf32>
    %367 = math.tanh %366 : vector<2x20xf32>
    %368 = vector.extract_strided_slice %365 {offsets = [0, 0], sizes = [2, 20], strides = [1, 1]} : vector<2x60xf32> to vector<2x20xf32>
    %369 = vector.extract_strided_slice %365 {offsets = [0, 20], sizes = [2, 20], strides = [1, 1]} : vector<2x60xf32> to vector<2x20xf32>
    %370 = vector.extract_strided_slice %365 {offsets = [0, 40], sizes = [2, 20], strides = [1, 1]} : vector<2x60xf32> to vector<2x20xf32>
    %371 = arith.mulf %369, %332 : vector<2x20xf32>
    %372 = arith.mulf %368, %367 : vector<2x20xf32>
    %373 = arith.addf %371, %372 : vector<2x20xf32>
    %374 = math.tanh %373 : vector<2x20xf32>
    %375 = arith.mulf %370, %374 : vector<2x20xf32>
    %376 = tpu.concatenate %375, %354 in 1 : vector<2x20xf32>, vector<2x20xf32> -> vector<2x40xf32>
    %377 = arith.truncf %376 : vector<2x40xf32> to vector<2x40xbf16>
    %cst_104 = arith.constant dense<0.000000e+00> : vector<2x80xf32>
    %378 = tpu.matmul %377, %5, %cst_104 {dimension_numbers = #tpu.dot_dimension_numbers<[1], [0], [0], [1], [0, 0, 1, 1], [], []>} : vector<2x40xbf16>, vector<40x80xbf16>, vector<2x80xf32> -> vector<2x80xf32>
    %379 = arith.addf %378, %8 : vector<2x80xf32>
    %380 = vector.extract_strided_slice %379 {offsets = [0, 0], sizes = [2, 60], strides = [1, 1]} : vector<2x80xf32> to vector<2x60xf32>
    %381 = arith.negf %380 : vector<2x60xf32>
    %382 = math.exp %381 : vector<2x60xf32>
    %cst_105 = arith.constant 1.000000e+00 : f32
    %383 = vector.broadcast %cst_105 : f32 to vector<2x60xf32>
    %384 = arith.addf %383, %382 : vector<2x60xf32>
    %385 = arith.divf %383, %384 : vector<2x60xf32>
    %386 = vector.extract_strided_slice %379 {offsets = [0, 60], sizes = [2, 20], strides = [1, 1]} : vector<2x80xf32> to vector<2x20xf32>
    %387 = math.tanh %386 : vector<2x20xf32>
    %388 = vector.extract_strided_slice %385 {offsets = [0, 0], sizes = [2, 20], strides = [1, 1]} : vector<2x60xf32> to vector<2x20xf32>
    %389 = vector.extract_strided_slice %385 {offsets = [0, 20], sizes = [2, 20], strides = [1, 1]} : vector<2x60xf32> to vector<2x20xf32>
    %390 = vector.extract_strided_slice %385 {offsets = [0, 40], sizes = [2, 20], strides = [1, 1]} : vector<2x60xf32> to vector<2x20xf32>
    %391 = arith.mulf %389, %352 : vector<2x20xf32>
    %392 = arith.mulf %388, %387 : vector<2x20xf32>
    %393 = arith.addf %391, %392 : vector<2x20xf32>
    %394 = math.tanh %393 : vector<2x20xf32>
    %395 = arith.mulf %390, %394 : vector<2x20xf32>
    %396 = vector.extract_strided_slice %145 {offsets = [0, 6, 0], sizes = [2, 1, 80], strides = [1, 1, 1]} : vector<2x8x80xf32> to vector<2x1x80xf32>
    %397 = vector.shape_cast %396 : vector<2x1x80xf32> to vector<2x80xf32>
    %398 = arith.truncf %375 : vector<2x20xf32> to vector<2x20xbf16>
    %cst_106 = arith.constant dense<0.000000e+00> : vector<2x80xf32>
    %399 = tpu.matmul %398, %3, %cst_106 {dimension_numbers = #tpu.dot_dimension_numbers<[1], [0], [0], [1], [0, 0, 1, 1], [], []>} : vector<2x20xbf16>, vector<20x80xbf16>, vector<2x80xf32> -> vector<2x80xf32>
    %400 = arith.addf %397, %399 : vector<2x80xf32>
    %401 = vector.extract_strided_slice %400 {offsets = [0, 0], sizes = [2, 60], strides = [1, 1]} : vector<2x80xf32> to vector<2x60xf32>
    %402 = arith.negf %401 : vector<2x60xf32>
    %403 = math.exp %402 : vector<2x60xf32>
    %cst_107 = arith.constant 1.000000e+00 : f32
    %404 = vector.broadcast %cst_107 : f32 to vector<2x60xf32>
    %405 = arith.addf %404, %403 : vector<2x60xf32>
    %406 = arith.divf %404, %405 : vector<2x60xf32>
    %407 = vector.extract_strided_slice %400 {offsets = [0, 60], sizes = [2, 20], strides = [1, 1]} : vector<2x80xf32> to vector<2x20xf32>
    %408 = math.tanh %407 : vector<2x20xf32>
    %409 = vector.extract_strided_slice %406 {offsets = [0, 0], sizes = [2, 20], strides = [1, 1]} : vector<2x60xf32> to vector<2x20xf32>
    %410 = vector.extract_strided_slice %406 {offsets = [0, 20], sizes = [2, 20], strides = [1, 1]} : vector<2x60xf32> to vector<2x20xf32>
    %411 = vector.extract_strided_slice %406 {offsets = [0, 40], sizes = [2, 20], strides = [1, 1]} : vector<2x60xf32> to vector<2x20xf32>
    %412 = arith.mulf %410, %373 : vector<2x20xf32>
    %413 = arith.mulf %409, %408 : vector<2x20xf32>
    %414 = arith.addf %412, %413 : vector<2x20xf32>
    %415 = math.tanh %414 : vector<2x20xf32>
    %416 = arith.mulf %411, %415 : vector<2x20xf32>
    %417 = tpu.concatenate %416, %395 in 1 : vector<2x20xf32>, vector<2x20xf32> -> vector<2x40xf32>
    %418 = arith.truncf %417 : vector<2x40xf32> to vector<2x40xbf16>
    %cst_108 = arith.constant dense<0.000000e+00> : vector<2x80xf32>
    %419 = tpu.matmul %418, %5, %cst_108 {dimension_numbers = #tpu.dot_dimension_numbers<[1], [0], [0], [1], [0, 0, 1, 1], [], []>} : vector<2x40xbf16>, vector<40x80xbf16>, vector<2x80xf32> -> vector<2x80xf32>
    %420 = arith.addf %419, %8 : vector<2x80xf32>
    %421 = vector.extract_strided_slice %420 {offsets = [0, 0], sizes = [2, 60], strides = [1, 1]} : vector<2x80xf32> to vector<2x60xf32>
    %422 = arith.negf %421 : vector<2x60xf32>
    %423 = math.exp %422 : vector<2x60xf32>
    %cst_109 = arith.constant 1.000000e+00 : f32
    %424 = vector.broadcast %cst_109 : f32 to vector<2x60xf32>
    %425 = arith.addf %424, %423 : vector<2x60xf32>
    %426 = arith.divf %424, %425 : vector<2x60xf32>
    %427 = vector.extract_strided_slice %420 {offsets = [0, 60], sizes = [2, 20], strides = [1, 1]} : vector<2x80xf32> to vector<2x20xf32>
    %428 = math.tanh %427 : vector<2x20xf32>
    %429 = vector.extract_strided_slice %426 {offsets = [0, 0], sizes = [2, 20], strides = [1, 1]} : vector<2x60xf32> to vector<2x20xf32>
    %430 = vector.extract_strided_slice %426 {offsets = [0, 20], sizes = [2, 20], strides = [1, 1]} : vector<2x60xf32> to vector<2x20xf32>
    %431 = vector.extract_strided_slice %426 {offsets = [0, 40], sizes = [2, 20], strides = [1, 1]} : vector<2x60xf32> to vector<2x20xf32>
    %432 = arith.mulf %430, %393 : vector<2x20xf32>
    %433 = arith.mulf %429, %428 : vector<2x20xf32>
    %434 = arith.addf %432, %433 : vector<2x20xf32>
    %435 = math.tanh %434 : vector<2x20xf32>
    %436 = arith.mulf %431, %435 : vector<2x20xf32>
    %437 = vector.extract_strided_slice %145 {offsets = [0, 7, 0], sizes = [2, 1, 80], strides = [1, 1, 1]} : vector<2x8x80xf32> to vector<2x1x80xf32>
    %438 = vector.shape_cast %437 : vector<2x1x80xf32> to vector<2x80xf32>
    %439 = arith.truncf %416 : vector<2x20xf32> to vector<2x20xbf16>
    %cst_110 = arith.constant dense<0.000000e+00> : vector<2x80xf32>
    %440 = tpu.matmul %439, %3, %cst_110 {dimension_numbers = #tpu.dot_dimension_numbers<[1], [0], [0], [1], [0, 0, 1, 1], [], []>} : vector<2x20xbf16>, vector<20x80xbf16>, vector<2x80xf32> -> vector<2x80xf32>
    %441 = arith.addf %438, %440 : vector<2x80xf32>
    %442 = vector.extract_strided_slice %441 {offsets = [0, 0], sizes = [2, 60], strides = [1, 1]} : vector<2x80xf32> to vector<2x60xf32>
    %443 = arith.negf %442 : vector<2x60xf32>
    %444 = math.exp %443 : vector<2x60xf32>
    %cst_111 = arith.constant 1.000000e+00 : f32
    %445 = vector.broadcast %cst_111 : f32 to vector<2x60xf32>
    %446 = arith.addf %445, %444 : vector<2x60xf32>
    %447 = arith.divf %445, %446 : vector<2x60xf32>
    %448 = vector.extract_strided_slice %441 {offsets = [0, 60], sizes = [2, 20], strides = [1, 1]} : vector<2x80xf32> to vector<2x20xf32>
    %449 = math.tanh %448 : vector<2x20xf32>
    %450 = vector.extract_strided_slice %447 {offsets = [0, 0], sizes = [2, 20], strides = [1, 1]} : vector<2x60xf32> to vector<2x20xf32>
    %451 = vector.extract_strided_slice %447 {offsets = [0, 20], sizes = [2, 20], strides = [1, 1]} : vector<2x60xf32> to vector<2x20xf32>
    %452 = vector.extract_strided_slice %447 {offsets = [0, 40], sizes = [2, 20], strides = [1, 1]} : vector<2x60xf32> to vector<2x20xf32>
    %453 = arith.mulf %451, %414 : vector<2x20xf32>
    %454 = arith.mulf %450, %449 : vector<2x20xf32>
    %455 = arith.addf %453, %454 : vector<2x20xf32>
    %456 = math.tanh %455 : vector<2x20xf32>
    %457 = arith.mulf %452, %456 : vector<2x20xf32>
    %458 = tpu.concatenate %457, %436 in 1 : vector<2x20xf32>, vector<2x20xf32> -> vector<2x40xf32>
    %459 = arith.truncf %458 : vector<2x40xf32> to vector<2x40xbf16>
    %cst_112 = arith.constant dense<0.000000e+00> : vector<2x80xf32>
    %460 = tpu.matmul %459, %5, %cst_112 {dimension_numbers = #tpu.dot_dimension_numbers<[1], [0], [0], [1], [0, 0, 1, 1], [], []>} : vector<2x40xbf16>, vector<40x80xbf16>, vector<2x80xf32> -> vector<2x80xf32>
    %461 = arith.addf %460, %8 : vector<2x80xf32>
    %462 = vector.extract_strided_slice %461 {offsets = [0, 0], sizes = [2, 60], strides = [1, 1]} : vector<2x80xf32> to vector<2x60xf32>
    %463 = arith.negf %462 : vector<2x60xf32>
    %464 = math.exp %463 : vector<2x60xf32>
    %cst_113 = arith.constant 1.000000e+00 : f32
    %465 = vector.broadcast %cst_113 : f32 to vector<2x60xf32>
    %466 = arith.addf %465, %464 : vector<2x60xf32>
    %467 = arith.divf %465, %466 : vector<2x60xf32>
    %468 = vector.extract_strided_slice %461 {offsets = [0, 60], sizes = [2, 20], strides = [1, 1]} : vector<2x80xf32> to vector<2x20xf32>
    %469 = math.tanh %468 : vector<2x20xf32>
    %470 = vector.extract_strided_slice %467 {offsets = [0, 0], sizes = [2, 20], strides = [1, 1]} : vector<2x60xf32> to vector<2x20xf32>
    %471 = vector.extract_strided_slice %467 {offsets = [0, 20], sizes = [2, 20], strides = [1, 1]} : vector<2x60xf32> to vector<2x20xf32>
    %472 = vector.extract_strided_slice %467 {offsets = [0, 40], sizes = [2, 20], strides = [1, 1]} : vector<2x60xf32> to vector<2x20xf32>
    %473 = arith.mulf %471, %434 : vector<2x20xf32>
    %474 = arith.mulf %470, %469 : vector<2x20xf32>
    %475 = arith.addf %473, %474 : vector<2x20xf32>
    %476 = math.tanh %475 : vector<2x20xf32>
    %477 = arith.mulf %472, %476 : vector<2x20xf32>
    %c0_114 = arith.constant 0 : index
    %c0_115 = arith.constant 0 : index
    %478 = vector.load %arg9[%c0_114, %c0_115] : memref<20x2xf32, #tpu.memory_space<vmem>>, vector<20x2xf32>
    %cst_116 = arith.constant dense<0.000000e+00> : vector<2x2xf32>
    %479 = tpu.matmul %477, %478, %cst_116 {dimension_numbers = #tpu.dot_dimension_numbers<[1], [0], [0], [1], [0, 0, 1, 1], [], []>} : vector<2x20xf32>, vector<20x2xf32>, vector<2x2xf32> -> vector<2x2xf32>
    %c0_117 = arith.constant 0 : index
    %c0_118 = arith.constant 0 : index
    %480 = vector.load %arg10[%c0_117, %c0_118] : memref<1x2xf32, #tpu.memory_space<vmem>>, vector<1x2xf32>
    %481 = vector.broadcast %480 : vector<1x2xf32> to vector<2x2xf32>
    %482 = arith.addf %479, %481 : vector<2x2xf32>
    %c0_119 = arith.constant 0 : index
    %c0_120 = arith.constant 0 : index
    %483 = vector.load %arg11[%c0_119, %c0_120] : memref<2x2xf32, #tpu.memory_space<vmem>>, vector<2x2xf32>
    tpu.vector_store %arg11[%c0_119, %c0_120], %482 {strides = array<i32>} : memref<2x2xf32, #tpu.memory_space<vmem>>, vector<2x2xf32>,
    return
  }
  func.func @transform_0(%arg0: i32) -> i32 {
    %c0_i32 = arith.constant 0 : i32
    %c0_i32_0 = arith.constant 0 : i32
    return %c0_i32 : i32
  }
  func.func @transform_1(%arg0: i32) -> (i32, i32) {
    %c0_i32 = arith.constant 0 : i32
    %c0_i32_0 = arith.constant 0 : i32
    %c0_i32_1 = arith.constant 0 : i32
    return %c0_i32, %c0_i32_0 : i32, i32
  }
  func.func @transform_2(%arg0: i32) -> (i32, i32) {
    %c0_i32 = arith.constant 0 : i32
    %c0_i32_0 = arith.constant 0 : i32
    %c0_i32_1 = arith.constant 0 : i32
    return %c0_i32, %c0_i32_0 : i32, i32
  }
  func.func @transform_3(%arg0: i32) -> (i32, i32) {
    %c0_i32 = arith.constant 0 : i32
    %c0_i32_0 = arith.constant 0 : i32
    %c0_i32_1 = arith.constant 0 : i32
    return %c0_i32, %c0_i32_0 : i32, i32
  }
  func.func @transform_4(%arg0: i32) -> (i32, i32) {
    %c0_i32 = arith.constant 0 : i32
    %c0_i32_0 = arith.constant 0 : i32
    %c0_i32_1 = arith.constant 0 : i32
    return %c0_i32, %c0_i32_0 : i32, i32
  }
  func.func @transform_5(%arg0: i32) -> (i32, i32) {
    %c0_i32 = arith.constant 0 : i32
    %c0_i32_0 = arith.constant 0 : i32
    %c0_i32_1 = arith.constant 0 : i32
    return %c0_i32, %c0_i32_0 : i32, i32
  }
  func.func @transform_6(%arg0: i32) -> (i32, i32) {
    %c0_i32 = arith.constant 0 : i32
    %c0_i32_0 = arith.constant 0 : i32
    %c0_i32_1 = arith.constant 0 : i32
    return %c0_i32, %c0_i32_0 : i32, i32
  }
  func.func @transform_7(%arg0: i32) -> (i32, i32) {
    %c0_i32 = arith.constant 0 : i32
    %c0_i32_0 = arith.constant 0 : i32
    %c0_i32_1 = arith.constant 0 : i32
    return %c0_i32, %c0_i32_0 : i32, i32
  }
  func.func @transform_8(%arg0: i32) -> (i32, i32) {
    %c0_i32 = arith.constant 0 : i32
    %c0_i32_0 = arith.constant 0 : i32
    %c0_i32_1 = arith.constant 0 : i32
    return %c0_i32, %c0_i32_0 : i32, i32
  }
  func.func @transform_9(%arg0: i32) -> (i32, i32) {
    %c0_i32 = arith.constant 0 : i32
    %c0_i32_0 = arith.constant 0 : i32
    %c0_i32_1 = arith.constant 0 : i32
    return %c0_i32, %c0_i32_0 : i32, i32
  }
  func.func @transform_10(%arg0: i32) -> (i32, i32) {
    %c0_i32 = arith.constant 0 : i32
    %c0_i32_0 = arith.constant 0 : i32
    return %arg0, %c0_i32 : i32, i32
  }
}

</mosaic_0001>

<bundles_post_ra>
// kernel: tpu_custom_call.1
= control target key start
LH: loop header
LB: loop body
LE: loop exit
PB: predicated region body
PF: predicated region fallthrough
CT: control target
= control target key end

     0   :  { %15 = vsyncpa [#allocation6], 0  ;;  %s3244_s0 = inlined_call_operand.vmem [shape: s32[16], index: 0, kind: input, shape index: {}]   ;;  %s3245_s1 = inlined_call_operand.vmem [shape: f32[20,20], index: 1, kind: input, shape index: {}]   ;;  %s3246_s2 = inlined_call_operand.hbm [shape: f32[8,20], index: 2, kind: input, shape index: {}]   ;;  %s3247_s3 = inlined_call_operand.hbm [shape: f32[20,80], index: 3, kind: input, shape index: {}]   ;;  %s3248_s4 = inlined_call_operand.hbm [shape: f32[20,80], index: 4, kind: input, shape index: {}]   ;;  %s3249_s5 = inlined_call_operand.vmem [shape: f32[1,80], index: 5, kind: input, shape index: {}]   ;;  %s3250_s6 = inlined_call_operand.hbm [shape: f32[40,80], index: 6, kind: input, shape index: {}]   ;;  %s3251_s7 = inlined_call_operand.vmem [shape: f32[1,80], index: 7, kind: input, shape index: {}]   ;;  %s3252_s8 = inlined_call_operand.vmem [shape: f32[20,2], index: 8, kind: input, shape index: {}]   ;;  %s3253_s9 = inlined_call_operand.vmem [shape: f32[1,2], index: 9, kind: input, shape index: {}]   ;;  %s3254_s10 = inlined_call_operand.hbm [shape: f32[2,2], index: 10, kind: output, shape index: {}]  }
   0x1   :  { %16 = vsyncpa [#allocation4], 0 }
   0x2   :  { %17 = vsyncpa [#allocation9], 0 }
   0x3   :  { %18 = vsyncpa [#allocation12], 0 }
   0x4   :  { %19 = vsyncpa [#allocation5], 0  ;;  %s2647_s13 = smov [#allocation8]   ;;  %s26_s17 = sshll.u32 %s3244_s0, 4  ;;  %s27_s17 = int_to_ptr.vmem [resolvable:$true] %s26_s17 }
   0x5   :  { %s47_s14 = sshll.u32 %s2647_s13, 4  ;;  %s48_s14 = int_to_ptr.vmem [resolvable:$true] %s47_s14 }
   0x6   :  { %s2533_s18 = scalar_lea.vmem %s48_s14, 384  ;;  %p2538_p1 = scmp.lt.s32.totalorder %s48_s14, %s48_s14 }
   0x7   :  { %p2534_p0 = scmp.ne.s32.totalorder %s48_s14, %s2533_s18  ;;  %p2539_p2 = scmp.lt.s32.totalorder %s2533_s18, %s2533_s18 }
   0x9   :  { %p2540_p3 = por %p2539_p2, %p2538_p1 }
   0xb   :  { %p2541_p4 = pnand %p2540_p3, %p2534_p0 }
   0xd   :  { %2544 = shalt.err (!%p2541_p4)
}
   0xe   :  { %s2648_s19 = smov 128   ;;  %s2649_s20 = smov 8  }
   0xf   :  { %53 = dma.hbm_to_vmem [thread:$0]  %s3247_s3, 384, %s48_s14, [#allocation9], %s2648_s19, %s2648_s19, %s2649_s20  }
  0x10   :  { %s2545_s23 = scalar_lea.vmem %s27_s17, 16  ;;  %p2550_p6 = scmp.lt.s32.totalorder %s27_s17, %s27_s17 }
  0x11   :  { %p2546_p5 = scmp.ne.s32.totalorder %s27_s17, %s2545_s23  ;;  %p2551_p7 = scmp.lt.s32.totalorder %s2545_s23, %s2545_s23 }
  0x13   :  { %p2552_p8 = por %p2551_p7, %p2550_p6 }
  0x15   :  { %p2553_p9 = pnand %p2552_p8, %p2546_p5 }
  0x17   :  { %2556 = shalt.err (!%p2553_p9)
}
  0x18   :  { %s2650_s0 = smov [#allocation3]   ;;  %s2651_s24 = smov [#allocation7]  }
  0x19   :  { %29 = dma.vmem_to_smem %s27_s17, 16, %s2650_s0, [#allocation6]  }
  0x1a   :  { %s38_s25 = sshll.u32 %s2651_s24, 4  ;;  %s2652_s26 = smov [#allocation10]   ;;  %s39_s25 = int_to_ptr.vmem [resolvable:$true] %s38_s25 }
  0x1b   :  { %s59_s27 = sshll.u32 %s2652_s26, 4  ;;  %s2565_s28 = scalar_lea.vmem %s39_s25, 128  ;;  %s60_s27 = int_to_ptr.vmem [resolvable:$true] %s59_s27 }
  0x1c   :  { %p2566_p10 = scmp.ne.s32.totalorder %s39_s25, %s2565_s28  ;;  %p2570_p11 = scmp.lt.s32.totalorder %s39_s25, %s39_s25 }
  0x1d   :  { %p2571_p12 = scmp.lt.s32.totalorder %s2565_s28, %s2565_s28 }
  0x1f   :  { %p2572_p13 = por %p2571_p12, %p2570_p11 }
  0x21   :  { %p2573_p0 = pnand %p2572_p13, %p2566_p10 }
  0x23   :  { %2576 = shalt.err (!%p2573_p0)
}
  0x24   :  { %41 = dma.hbm_to_vmem [thread:$0]  %s3246_s2, 128, %s39_s25, [#allocation4]  }
  0x25   :  { %s2585_s30 = scalar_lea.vmem %s60_s27, 384  ;;  %p2590_p2 = scmp.lt.s32.totalorder %s60_s27, %s60_s27 }
  0x26   :  { %p2586_p1 = scmp.ne.s32.totalorder %s60_s27, %s2585_s30  ;;  %p2591_p3 = scmp.lt.s32.totalorder %s2585_s30, %s2585_s30 }
  0x28   :  { %p2592_p4 = por %p2591_p3, %p2590_p2 }
  0x2a   :  { %p2593_p5 = pnand %p2592_p4, %p2586_p1 }
  0x2c   :  { %2596 = shalt.err (!%p2593_p5)
}
  0x2d   :  { %65 = dma.hbm_to_vmem [thread:$0]  %s3248_s4, 384, %s60_s27, [#allocation9], %s2648_s19, %s2648_s19, %s2649_s20  }
  0x2e   :  { %s2653_s13 = smov [#allocation11]  }
  0x2f   :  { %s73_s14 = sshll.u32 %s2653_s13, 4  ;;  %s74_s14 = int_to_ptr.vmem [resolvable:$true] %s73_s14 }
  0x30   :  { %s2605_s15 = scalar_lea.vmem %s74_s14, 640  ;;  %p2610_p7 = scmp.lt.s32.totalorder %s74_s14, %s74_s14 }
  0x31   :  { %p2606_p6 = scmp.ne.s32.totalorder %s74_s14, %s2605_s15  ;;  %p2611_p8 = scmp.lt.s32.totalorder %s2605_s15, %s2605_s15 }
  0x33   :  { %p2612_p9 = por %p2611_p8, %p2610_p7 }
  0x35   :  { %p2613_p10 = pnand %p2612_p9, %p2606_p6 }
  0x37   :  { %2616 = shalt.err (!%p2613_p10)
}
  0x38   :  { %79 = dma.hbm_to_vmem [thread:$0]  %s3250_s6, 640, %s74_s14, [#allocation12], %s2648_s19, %s2648_s19, %s2649_s20  }
  0x39   :  { %2637 = dma.done.wait [#allocation6], 16  }
  0x3a   :  { %2638 = vsyncadd [#allocation6], 4294967280 }
  0x3b   :  { %2639 = dma.done.wait [#allocation4], 128  }
  0x3c   :  { %2640 = vsyncadd [#allocation4], 4294967168 }
  0x3d   :  { %2641 = dma.done.wait [#allocation9], 768  }
  0x3e   :  { %2642 = vsyncadd [#allocation9], 4294966528 }
  0x3f   :  { %2643 = dma.done.wait [#allocation12], 640  }
  0x40   :  { %2644 = vsyncadd [#allocation12], 4294966656 }
  0x41   :  { %101 = sfence }
  0x42   :  { %v110_v0 = vld [vmem:[#allocation10 + $0x10] sm:$0xf]  ;;  %vm255_vm0 = vcmask 1041408   ;;  %v105_v1 = vld [vmem:[#allocation8 + $0x10] sm:$0xf]  ;;  %v2654_v2 = vmov 0.0  }
  0x43   :  { %2159 = vmatprep.subr.bf16.mxu1 %v2654_v2  ;;  %v112_v3 = vpack.c.bf16 %v110_v0, %v110_v0  ;;  %2151 = vmatprep.subr.bf16.mxu0 %v2654_v2  ;;  %v107_v4 = vpack.c.bf16 %v105_v1, %v105_v1  ;;  %v108_v5 = vld [vmem:[#allocation10] sm:$0xff]  ;;  %v109_v6 = vld [vmem:[#allocation10 + $0x8] sm:$0xff]  ;;  %v104_v8 = vld [vmem:[#allocation8 + $0x8] sm:$0xff]  ;;  %vm2655_vm1 = vmmov 0   ;;  %s129_s4 = sld [smem:[#allocation3]]  ;;  %vm134_vm2 = vcmask 155648  }
  0x44   :  { %v103_v7 = vld [vmem:[#allocation8] sm:$0xff]  ;;  %2163 = vmatprep.mubr.msk.bf16.mxu1 %vm2655_vm1, %v2654_v2  ;;  %2155 = vmatprep.mubr.msk.bf16.mxu0 %vm2655_vm1, %v2654_v2  ;;  %s2029_s6 = sld [smem:[#allocation3 + $0x1]]  ;;  %v2752_v11 = vpack.c.bf16 %v109_v6, %v108_v5  ;;  %v132_v13 = vld [vmem:[#allocation7] sm:$0x1]  ;;  %v140_v14 = vld [vmem:[#allocation7 + $0x1] sm:$0x1] }
  0x45   :  { %v2748_v9 = vsel %vm255_vm0, %v112_v3, 0  ;;  %v257_v10 = vsel %vm255_vm0, %v107_v4, 0  ;;  %v106_v12 = vpack.c.bf16 %v104_v8, %v103_v7  ;;  %s2030_s17 = sld [smem:[#allocation3 + $0x2]]  ;;  %v147_v16 = vld [vmem:[#allocation7 + $0x2] sm:$0x1]  ;;  %v2656_v20 = vmov 0  }
  0x46   :  { %2160 = vmatpush3.bf16.msra.mxu1 %v2748_v9  ;;  %2152 = vmatpush3.bf16.msra.mxu0 %v257_v10  ;;  %s2756_s18 = sld [smem:[#allocation3 + $0x3]]  ;;  %v154_v19 = vld [vmem:[#allocation7 + $0x3] sm:$0x1]  ;;  %v161_v23 = vld [vmem:[#allocation7 + $0x4] sm:$0x1]  ;;  %vm251_vm3 = vcmask 162816  }
  0x47   :  { %2161 = vmatprep.subr.bf16.mxu1 %v2654_v2  ;;  %2153 = vmatprep.subr.bf16.mxu0 %v2654_v2  ;;  %s2758_s19 = sld [smem:[#allocation3 + $0x4]]  ;;  %v168_v26 = vld [vmem:[#allocation7 + $0x5] sm:$0x1]  ;;  %v175_v29 = vld [vmem:[#allocation7 + $0x6] sm:$0x1]  ;;  %vm414_vm4 = vcmask 1043456  }
  0x48   :  { %s2760_s20 = sld [smem:[#allocation3 + $0x5]]  ;;  %v182_v32 = vld [vmem:[#allocation7 + $0x7] sm:$0x1]  ;;  %v189_v35 = vld [vmem:[#allocation7] sm:$0x1]  ;;  %vm403_vm5 = vcmask 1041409  }
  0x49   :  { %s130_s23 = scalar_lea.vmem %s3245_s1, %s129_s4  ;;  %s2766_s0 = sld [smem:[#allocation3 + $0x6]]  ;;  %v196_v38 = vld [vmem:[#allocation7 + $0x1] sm:$0x1]  ;;  %v203_v41 = vld [vmem:[#allocation7 + $0x2] sm:$0x1]  ;;  %vm410_vm6 = vcmask 326656  }
  0x4a   :  { %2162 = vmatpush3.bf16.msra.mxu1 %v2752_v11  ;;  %2154 = vmatpush3.bf16.msra.mxu0 %v106_v12  ;;  %v131_v15 = vld [vmem:[%s130_s23] sm:$0x1]  ;;  %s138_s26 = scalar_lea.vmem %s3245_s1, %s2029_s6  ;;  %s2771_s27 = sld [smem:[#allocation3 + $0x7]]  ;;  %v210_v44 = vld [vmem:[#allocation7 + $0x3] sm:$0x1]  ;;  %vm599_vm7 = vcmask 1042434  }
  0x4b   :  { %2167 = vmatprep.subr.bf16.mxu0 %v2654_v2  ;;  %2177 = vmatprep.subr.bf16.mxu1 %v2654_v2  ;;  %v133_v17 = vadd.f32 %v132_v13, %v131_v15  ;;  %v139_v18 = vld [vmem:[%s138_s26] sm:$0x1]  ;;  %s145_s29 = scalar_lea.vmem %s3245_s1, %s2030_s17  ;;  %s2778_s30 = sld [smem:[#allocation3 + $0x8]]  ;;  %v217_v47 = vld [vmem:[#allocation7 + $0x4] sm:$0x1]  ;;  %vm803_vm8 = vcmask 1043459  }
  0x4c   :  { %v141_v21 = vadd.f32 %v140_v14, %v139_v18  ;;  %v146_v22 = vld [vmem:[%s145_s29] sm:$0x1]  ;;  %s152_s13 = scalar_lea.vmem %s3245_s1, %s2756_s18  ;;  %s2784_s14 = sld [smem:[#allocation3 + $0x9]]  ;;  %v224_v50 = vld [vmem:[#allocation7 + $0x5] sm:$0x1]  ;;  %vm1003_vm9 = vcmask 1044484  }
  0x4d   :  { %2164 = vmatmul.mubr.bf16.vlgmr.msra.gmra.mxu1 %v2656_v20  ;;  %135 = vst.msk [vmem:[#allocation2] sm:$0x1] %vm134_vm2, %v133_v17  ;;  %v148_v24 = vadd.f32 %v147_v16, %v146_v22  ;;  %v153_v25 = vld [vmem:[%s152_s13] sm:$0x1]  ;;  %s159_s16 = scalar_lea.vmem %s3245_s1, %s2758_s19  ;;  %s2791_s4 = sld [smem:[#allocation3 + $0xa]]  ;;  %vm1209_vm10 = vcmask 1045509  }
  0x4e   :  { %2178 = vmatpush3.bf16.msra.mxu1 %v2748_v9  ;;  %2181 = vmatprep.mubr.msk.bf16.mxu1 %vm2655_vm1, %v2654_v2  ;;  %142 = vst.msk [vmem:[#allocation2 + $0x1] sm:$0x1] %vm134_vm2, %v141_v21  ;;  %v155_v27 = vadd.f32 %v154_v19, %v153_v25  ;;  %v160_v28 = vld [vmem:[%s159_s16] sm:$0x1]  ;;  %s166_s18 = scalar_lea.vmem %s3245_s1, %s2760_s20  ;;  %s2801_s21 = sld [smem:[#allocation3 + $0xb]]  ;;  %vm1409_vm11 = vcmask 1046534  }
  0x4f   :  { %2179 = vmatprep.subr.bf16.mxu1 %v2654_v2  ;;  %149 = vst.msk [vmem:[#allocation2 + $0x2] sm:$0x1] %vm134_vm2, %v148_v24  ;;  %v162_v30 = vadd.f32 %v161_v23, %v160_v28  ;;  %v167_v31 = vld [vmem:[%s166_s18] sm:$0x1]  ;;  %s173_s23 = scalar_lea.vmem %s3245_s1, %s2766_s0  ;;  %s2809_s24 = sld [smem:[#allocation3 + $0xc]]  ;;  %vm1615_vm12 = vcmask 1047559  }
  0x50   :  { %156 = vst.msk [vmem:[#allocation2 + $0x3] sm:$0x1] %vm134_vm2, %v155_v27  ;;  %v169_v33 = vadd.f32 %v168_v26, %v167_v31  ;;  %v174_v34 = vld [vmem:[%s173_s23] sm:$0x1]  ;;  %s180_s26 = scalar_lea.vmem %s3245_s1, %s2771_s27  ;;  %s2816_s28 = sld [smem:[#allocation3 + $0xd]]  ;;  %vm1992_vm13 = vcmask 9216  }
  0x51   :  { %163 = vst.msk [vmem:[#allocation2 + $0x4] sm:$0x1] %vm134_vm2, %v162_v30  ;;  %v176_v36 = vadd.f32 %v175_v29, %v174_v34  ;;  %v181_v37 = vld [vmem:[%s180_s26] sm:$0x1]  ;;  %s187_s29 = scalar_lea.vmem %s3245_s1, %s2778_s30  ;;  %s2823_s11 = sld [smem:[#allocation3 + $0xe]] }
  0x52   :  { %2180 = vmatpush3.bf16.msra.mxu1 %v2752_v11  ;;  %170 = vst.msk [vmem:[#allocation2 + $0x5] sm:$0x1] %vm134_vm2, %v169_v33  ;;  %v183_v39 = vadd.f32 %v182_v32, %v181_v37  ;;  %v188_v40 = vld [vmem:[%s187_s29] sm:$0x1]  ;;  %s194_s13 = scalar_lea.vmem %s3245_s1, %s2784_s14  ;;  %s2831_s15 = sld [smem:[#allocation3 + $0xf]] }
  0x53   :  { %2185 = vmatprep.subr.bf16.mxu1 %v2654_v2  ;;  %177 = vst.msk [vmem:[#allocation2 + $0x6] sm:$0x1] %vm134_vm2, %v176_v36  ;;  %v190_v42 = vadd.f32 %v189_v35, %v188_v40  ;;  %v195_v43 = vld [vmem:[%s194_s13] sm:$0x1]  ;;  %s201_s16 = scalar_lea.vmem %s3245_s1, %s2791_s4  ;;  %v231_v53 = vld [vmem:[#allocation7 + $0x6] sm:$0x1] }
  0x54   :  { %184 = vst.msk [vmem:[#allocation2 + $0x7] sm:$0x1] %vm134_vm2, %v183_v39  ;;  %v197_v45 = vadd.f32 %v196_v38, %v195_v43  ;;  %v202_v46 = vld [vmem:[%s201_s16] sm:$0x1]  ;;  %s208_s17 = scalar_lea.vmem %s3245_s1, %s2801_s21  ;;  %v238_v56 = vld [vmem:[#allocation7 + $0x7] sm:$0x1] }
  0x55   :  { %191 = vst.msk [vmem:[#allocation2 + $0x8] sm:$0x1] %vm134_vm2, %v190_v42  ;;  %v204_v48 = vadd.f32 %v203_v41, %v202_v46  ;;  %v209_v49 = vld [vmem:[%s208_s17] sm:$0x1]  ;;  %s215_s4 = scalar_lea.vmem %s3245_s1, %s2809_s24  ;;  %s2657_s29 = smov 68   ;;  %v117_v39 = vld [vmem:[#allocation11 + $0x20] sm:$0xff] }
  0x56   :  { %198 = vst.msk [vmem:[#allocation2 + $0x9] sm:$0x1] %vm134_vm2, %v197_v45  ;;  %v211_v51 = vadd.f32 %v210_v44, %v209_v49  ;;  %v216_v52 = vld [vmem:[%s215_s4] sm:$0x1]  ;;  %s222_s20 = scalar_lea.vmem %s3245_s1, %s2816_s28  ;;  %v120_v40 = vpack.c.bf16 %v117_v39, %v117_v39  ;;  %v115_v41 = vld [vmem:[#allocation11 + $0x10] sm:$0xff]  ;;  %v113_v46 = vld [vmem:[#allocation11] sm:$0xff] }
  0x57   :  { %205 = vst.msk [vmem:[#allocation2 + $0xa] sm:$0x1] %vm134_vm2, %v204_v48  ;;  %v218_v54 = vadd.f32 %v217_v47, %v216_v52  ;;  %v223_v55 = vld [vmem:[%s222_s20] sm:$0x1]  ;;  %s229_s26 = scalar_lea.vmem %s3245_s1, %s2823_s11  ;;  %v114_v47 = vld [vmem:[#allocation11 + $0x8] sm:$0xff]  ;;  %s2659_s11 = smov 88  }
  0x58   :  { %212 = vst.msk [vmem:[#allocation2 + $0xb] sm:$0x1] %vm134_vm2, %v211_v51  ;;  %v225_v57 = vadd.f32 %v224_v50, %v223_v55  ;;  %v230_v58 = vld [vmem:[%s229_s26] sm:$0x1]  ;;  %s236_s3 = scalar_lea.vmem %s3245_s1, %s2831_s15  ;;  %v2892_v44 = vsel %vm414_vm4, %v120_v40, 0  ;;  %v2901_v48 = vpack.c.bf16 %v114_v47, %v113_v46  ;;  %s2660_s13 = smov 108  }
  0x59   :  { %219 = vst.msk [vmem:[#allocation2 + $0xc] sm:$0x1] %vm134_vm2, %v218_v54  ;;  %v232_v59 = vadd.f32 %v231_v53, %v230_v58  ;;  %v237_v60 = vld [vmem:[%s236_s3] sm:$0x1]  ;;  %s2661_s4 = smov [#allocation13]  }
  0x5a   :  { %226 = vst.msk [vmem:[#allocation2 + $0xd] sm:$0x1] %vm134_vm2, %v225_v57  ;;  %v239_v61 = vadd.f32 %v238_v56, %v237_v60  ;;  %v2044_v7 = vld [vmem:[%s3249_s5] ss:$0 sm:$0xff]  ;;  %s2658_s5 = smov 20  }
  0x5b   :  { %233 = vst.msk [vmem:[#allocation2 + $0xe] sm:$0x1] %vm134_vm2, %v232_v59  ;;  %v241_v62 = vld [vmem:[#allocation2] sm:$0xff] }
  0x5c   :  { %240 = vst.msk [vmem:[#allocation2 + $0xf] sm:$0x1] %vm134_vm2, %v239_v61  ;;  %v116_v42 = vld [vmem:[#allocation11 + $0x18] sm:$0xff] }
  0x5d   :  { %v2896_v45 = vpack.c.bf16 %v116_v42, %v115_v41 }
  0x63   :  { %v242_v63 = vld [vmem:[#allocation2 + $0x8] sm:$0xff] }
  0x64   :  { %v243_v0 = vpack.c.bf16 %v242_v63, %v241_v62 }
  0x66   :  { %2156 = vmatmul.mubr.msk.bf16.vlgmr.msra.gmra.mxu0 %vm251_vm3, %v243_v0 }
  0x67   :  { %2173 = vmatprep.mubr.msk.bf16.mxu0 %vm2655_vm1, %v2654_v2  ;;  %2168 = vmatpush3.bf16.msra.mxu0 %v2892_v44 }
  0x68   :  { %2169 = vmatprep.subr.bf16.mxu0 %v2654_v2 }
  0x6b   :  { %2170 = vmatpush3.bf16.msra.mxu0 %v2896_v45 }
  0x6c   :  { %2171 = vmatprep.subr.bf16.mxu0 %v2654_v2 }
  0x6f   :  { %2172 = vmatpush3.bf16.msra.mxu0 %v2901_v48 }
  0x70   :  { %2195 = vmatprep.subr.bf16.mxu0 %v2654_v2 }
 0x10d   :  { %v340_v1 = vpop.f32.mrf.mxu1 }
 0x10e   :  { %v347_v10 = vrot.slane %v340_v1, 1 }
 0x10f   :  { %v2165_v3 = vpop.f32.mrf.mxu1 }
 0x111   :  { %v343_v4 = vpop.f32.mrf.mxu1 }
 0x113   :  { %v2166_v5 = vpop.f32.mrf.mxu1 }
 0x126   :  { %v293_v6 = vpop.f32.mrf.mxu0 }
 0x127   :  { %v2874_v13 = vadd.f32 %v2044_v7, %v293_v6 }
 0x128   :  { %v2157_v8 = vpop.f32.mrf.mxu0 }
 0x129   :  { %v350_v17 = vadd.f32 %v340_v1, %v2874_v13 }
 0x12a   :  { %v296_v12 = vpop.f32.mrf.mxu0 }
 0x12b   :  { %v2876_v14 = vadd.f32 %v2044_v7, %v296_v12  ;;  %v2046_v21 = vmul.f32 -1.442695, %v350_v17  ;;  %v2930_v12 = vld [vmem:[%s3251_s7] ss:$0 sm:$0xff] }
 0x12c   :  { %v2158_v15 = vpop.f32.mrf.mxu0 }
 0x12d   :  { %v351_v16 = vadd.f32 %v347_v10, %v2876_v14 }
 0x12f   :  { %2332 = vtanh.f32 %v351_v16  ;;  %v2047_v20 = vmul.f32 -1.442695, %v351_v16 }
 0x130   :  { %2334 = vtanh.f32 %v350_v17 }
 0x131   :  { %2336 = vpow2.f32 %v2047_v20 }
 0x132   :  { %2338 = vpow2.f32 %v2046_v21 }
 0x13c   :  { %v2333_v18 = vpop.eup %2332 }
 0x13d   :  { %372 = vrot.lane.b32.xlu0 %v2333_v18, %s2657_s29  ;;  %v2335_v19 = vpop.eup %2334 }
 0x13e   :  { %v2337_v22 = vpop.eup %2336 }
 0x13f   :  { %v359_v23 = vadd.f32 1.0, %v2337_v22  ;;  %v2339_v24 = vpop.eup %2338 }
 0x140   :  { %v358_v25 = vadd.f32 1.0, %v2339_v24 }
 0x141   :  { %370 = vrot.lane.b32.xlu0 %v2335_v19, %s2657_s29  ;;  %2340 = vrcp.f32 %v359_v23 }
 0x142   :  { %2342 = vrcp.f32 %v358_v25 }
 0x14e   :  { %v2341_v26 = vpop.eup %2340 }
 0x14f   :  { %v2343_v29 = vpop.eup %2342  ;;  %v367_v32 = vmul.f32 0.0, %v2341_v26 }
 0x150   :  { %v366_v35 = vmul.f32 0.0, %v2343_v29 }
 0x1af   :  { %v373_v27 = vpop.permute.xlu0 %372 }
 0x1b0   :  { %v377_v28 = vmul.f32 %v2341_v26, %v373_v27 }
 0x1b2   :  { %382 = vrot.lane.b32.xlu1 %v377_v28, %s2658_s5 }
 0x1b3   :  { %v371_v30 = vpop.permute.xlu0 %370 }
 0x1b4   :  { %v376_v31 = vmul.f32 %v2343_v29, %v371_v30 }
 0x1b6   :  { %380 = vrot.lane.b32.xlu1 %v376_v31, %s2658_s5 }
 0x224   :  { %v383_v33 = vpop.permute.xlu1 %382 }
 0x225   :  { %v2884_v34 = vadd.f32 %v383_v33, %v367_v32 }
 0x227   :  { %2344 = vtanh.f32 %v2884_v34 }
 0x228   :  { %v381_v36 = vpop.permute.xlu1 %380 }
 0x229   :  { %v2887_v37 = vadd.f32 %v381_v36, %v366_v35 }
 0x22b   :  { %2346 = vtanh.f32 %v2887_v37  ;;  %v558_v47 = vrot.slane %v2887_v37, 7 }
 0x234   :  { %v2345_v38 = vpop.eup %2344 }
 0x235   :  { %394 = vrot.lane.b32.xlu0 %v2345_v38, %s2658_s5 }
 0x238   :  { %v2347_v43 = vpop.eup %2346 }
 0x239   :  { %392 = vrot.lane.b32.xlu1 %v2347_v43, %s2658_s5  ;;  %v559_v43 = vrot.slane %v2884_v34, 7 }
 0x2a7   :  { %v395_v49 = vpop.permute.xlu0 %394 }
 0x2a8   :  { %v399_v50 = vmul.f32 %v2341_v26, %v395_v49 }
 0x2aa   :  { %v483_v51 = vpack.c.bf16 %v399_v50, %v399_v50  ;;  %v402_v53 = vrot.slane %v399_v50, 7 }
 0x2ab   :  { %v393_v52 = vpop.permute.xlu1 %392 }
 0x2ac   :  { %v487_v54 = vunpack.c.l.b16 %v483_v51  ;;  %v398_v55 = vmul.f32 %v2343_v29, %v393_v52 }
 0x2ae   :  { %v482_v56 = vpack.c.bf16 %v398_v55, %v398_v55  ;;  %v404_v57 = vsel %vm403_vm5, %v402_v53, %v398_v55  ;;  %v488_v58 = vrot.slane %v487_v54, 7 }
 0x2af   :  { %405 = vrot.lane.b32.xlu1 %v404_v57, %s2659_s11 }
 0x2b0   :  { %v486_v59 = vunpack.c.l.b16 %v482_v56 }
 0x2b2   :  { %v489_v60 = vsel %vm403_vm5, %v488_v58, %v486_v59 }
 0x2b3   :  { %v490_v61 = vpack.c.b16 %v489_v60, %v489_v60 }
 0x2b5   :  { %491 = vrot.lane.b32.xlu0 %v490_v61, %s2659_s11 }
 0x321   :  { %v406_v62 = vpop.permute.xlu1 %405 }
 0x322   :  { %v408_v63 = vsel %vm251_vm3, %v406_v62, 0.0 }
 0x323   :  { %v409_v0 = vpack.c.bf16 %v408_v63, %v408_v63 }
 0x325   :  { %2174 = vmatmul.mubr.msk.bf16.vlgmr.msra.gmra.mxu0 %vm410_vm6, %v409_v0 }
 0x326   :  { %2196 = vmatpush3.bf16.msra.mxu0 %v2748_v9  ;;  %2199 = vmatprep.mubr.msk.bf16.mxu0 %vm2655_vm1, %v2654_v2 }
 0x327   :  { %v492_v1 = vpop.permute.xlu0 %491  ;;  %2197 = vmatprep.subr.bf16.mxu0 %v2654_v2 }
 0x328   :  { %2182 = vmatmul.mubr.msk.bf16.vlgmr.msra.gmra.mxu1 %vm251_vm3, %v492_v1 }
 0x329   :  { %2186 = vmatpush3.bf16.msra.mxu1 %v2892_v44  ;;  %2191 = vmatprep.mubr.msk.bf16.mxu1 %vm2655_vm1, %v2654_v2 }
 0x32a   :  { %2198 = vmatpush3.bf16.msra.mxu0 %v2752_v11  ;;  %2187 = vmatprep.subr.bf16.mxu1 %v2654_v2 }
 0x32b   :  { %2203 = vmatprep.subr.bf16.mxu0 %v2654_v2 }
 0x32d   :  { %2188 = vmatpush3.bf16.msra.mxu1 %v2896_v45 }
 0x32e   :  { %2189 = vmatprep.subr.bf16.mxu1 %v2654_v2 }
 0x331   :  { %2190 = vmatpush3.bf16.msra.mxu1 %v2901_v48 }
 0x332   :  { %2213 = vmatprep.subr.bf16.mxu1 %v2654_v2 }
 0x3e5   :  { %v452_v3 = vpop.f32.mrf.mxu0 }
 0x3e6   :  { %v453_v18 = vadd.f32 %v2930_v12, %v452_v3 }
 0x3e7   :  { %v2175_v4 = vpop.f32.mrf.mxu0 }
 0x3e8   :  { %v530_v5 = vpop.f32.mrf.mxu1  ;;  %v2049_v25 = vmul.f32 -1.442695, %v453_v18 }
 0x3e9   :  { %v537_v6 = vrot.slane %v530_v5, 7  ;;  %v541_v7 = vadd.f32 %v530_v5, %v2876_v14  ;;  %v455_v8 = vpop.f32.mrf.mxu0 }
 0x3ea   :  { %v2183_v10 = vpop.f32.mrf.mxu1 }
 0x3eb   :  { %v540_v15 = vadd.f32 %v537_v6, %v2874_v13  ;;  %2348 = vtanh.f32 %v541_v7  ;;  %v2176_v16 = vpop.f32.mrf.mxu0  ;;  %v2052_v23 = vmul.f32 -1.442695, %v541_v7 }
 0x3ec   :  { %v533_v17 = vpop.f32.mrf.mxu1 }
 0x3ed   :  { %2350 = vtanh.f32 %v540_v15  ;;  %v2051_v24 = vmul.f32 -1.442695, %v540_v15 }
 0x3ee   :  { %v2184_v19 = vpop.f32.mrf.mxu1  ;;  %2352 = vtanh.f32 %v453_v18 }
 0x3ef   :  { %2354 = vpow2.f32 %v2052_v23 }
 0x3f0   :  { %2356 = vpow2.f32 %v2051_v24 }
 0x3f1   :  { %2358 = vpow2.f32 %v2049_v25 }
 0x3f8   :  { %v2349_v20 = vpop.eup %2348 }
 0x3f9   :  { %568 = vrot.lane.b32.xlu1 %v2349_v20, %s2657_s29 }
 0x3fa   :  { %v2351_v21 = vpop.eup %2350 }
 0x3fb   :  { %566 = vrot.lane.b32.xlu0 %v2351_v21, %s2657_s29  ;;  %v2353_v22 = vpop.eup %2352 }
 0x3fc   :  { %v2355_v26 = vpop.eup %2354 }
 0x3fd   :  { %v2357_v27 = vpop.eup %2356  ;;  %v549_v28 = vadd.f32 1.0, %v2355_v26 }
 0x3fe   :  { %v548_v29 = vadd.f32 1.0, %v2357_v27  ;;  %v2359_v30 = vpop.eup %2358 }
 0x3ff   :  { %467 = vrot.lane.b32.xlu0 %v2353_v22, %s2657_s29  ;;  %2360 = vrcp.f32 %v549_v28  ;;  %v461_v31 = vadd.f32 1.0, %v2359_v30 }
 0x400   :  { %2362 = vrcp.f32 %v548_v29 }
 0x401   :  { %2364 = vrcp.f32 %v461_v31 }
 0x40c   :  { %v2361_v32 = vpop.eup %2360 }
 0x40d   :  { %v2363_v36 = vpop.eup %2362  ;;  %v563_v46 = vmul.f32 %v2361_v32, %v559_v43 }
 0x40e   :  { %v2365_v40 = vpop.eup %2364  ;;  %v562_v51 = vmul.f32 %v2363_v36, %v558_v47 }
 0x40f   :  { %v465_v54 = vmul.f32 0.0, %v2365_v40 }
 0x46b   :  { %v569_v33 = vpop.permute.xlu1 %568 }
 0x46c   :  { %v573_v35 = vmul.f32 %v2361_v32, %v569_v33 }
 0x46d   :  { %v567_v38 = vpop.permute.xlu0 %566 }
 0x46e   :  { %578 = vrot.lane.b32.xlu0 %v573_v35, %s2658_s5  ;;  %v572_v39 = vmul.f32 %v2363_v36, %v567_v38 }
 0x470   :  { %576 = vrot.lane.b32.xlu1 %v572_v39, %s2658_s5 }
 0x471   :  { %v468_v41 = vpop.permute.xlu0 %467 }
 0x472   :  { %v470_v42 = vmul.f32 %v2365_v40, %v468_v41 }
 0x474   :  { %472 = vrot.lane.b32.xlu1 %v470_v42, %s2658_s5 }
 0x4e0   :  { %v579_v49 = vpop.permute.xlu0 %578 }
 0x4e1   :  { %v2942_v50 = vadd.f32 %v579_v49, %v563_v46 }
 0x4e2   :  { %v577_v52 = vpop.permute.xlu1 %576 }
 0x4e3   :  { %2366 = vtanh.f32 %v2942_v50  ;;  %v2945_v53 = vadd.f32 %v577_v52, %v562_v51 }
 0x4e5   :  { %2368 = vtanh.f32 %v2945_v53 }
 0x4e6   :  { %v473_v55 = vpop.permute.xlu1 %472 }
 0x4e7   :  { %v2948_v56 = vadd.f32 %v473_v55, %v465_v54 }
 0x4e9   :  { %2370 = vtanh.f32 %v2948_v56 }
 0x4f0   :  { %v2367_v34 = vpop.eup %2366 }
 0x4f1   :  { %590 = vrot.lane.b32.xlu1 %v2367_v34, %s2658_s5 }
 0x4f2   :  { %v2369_v37 = vpop.eup %2368 }
 0x4f3   :  { %588 = vrot.lane.b32.xlu0 %v2369_v37, %s2658_s5 }
 0x4f6   :  { %v2371_v57 = vpop.eup %2370 }
 0x4f7   :  { %478 = vrot.lane.b32.xlu0 %v2371_v57, %s2658_s5 }
 0x563   :  { %v591_v58 = vpop.permute.xlu1 %590 }
 0x564   :  { %v595_v59 = vmul.f32 %v2361_v32, %v591_v58 }
 0x565   :  { %v589_v61 = vpop.permute.xlu0 %588 }
 0x566   :  { %v598_v60 = vrot.slane %v595_v59, 7  ;;  %v594_v62 = vmul.f32 %v2363_v36, %v589_v61  ;;  %v686_v63 = vpack.c.bf16 %v595_v59, %v595_v59 }
 0x568   :  { %v685_v0 = vpack.c.bf16 %v594_v62, %v594_v62  ;;  %v600_v1 = vsel %vm599_vm7, %v598_v60, %v594_v62  ;;  %v690_v4 = vunpack.c.l.b16 %v686_v63 }
 0x569   :  { %601 = vrot.lane.b32.xlu0 %v600_v1, %s2659_s11  ;;  %v479_v6 = vpop.permute.xlu0 %478  ;;  %v762_v1 = vrot.slane %v2945_v53, 7 }
 0x56a   :  { %v689_v3 = vunpack.c.l.b16 %v685_v0  ;;  %v481_v8 = vmul.f32 %v2365_v40, %v479_v6 }
 0x56c   :  { %v691_v5 = vrot.slane %v689_v3, 1  ;;  %v605_v15 = vrot.slane %v481_v8, 7  ;;  %v763_v3 = vrot.slane %v2942_v50, 7 }
 0x56e   :  { %v692_v7 = vsel %vm403_vm5, %v690_v4, %v691_v5 }
 0x56f   :  { %v693_v10 = vpack.c.b16 %v692_v7, %v692_v7 }
 0x571   :  { %694 = vrot.lane.b32.xlu1 %v693_v10, %s2659_s11 }
 0x575   :  { %606 = vrot.lane.b32.xlu1 %v605_v15, %s2660_s13 }
 0x5db   :  { %v602_v17 = vpop.permute.xlu0 %601 }
 0x5e3   :  { %v695_v16 = vpop.permute.xlu1 %694 }
 0x5e4   :  { %2200 = vmatmul.mubr.msk.bf16.vlgmr.msra.gmra.mxu0 %vm251_vm3, %v695_v16 }
 0x5e5   :  { %2204 = vmatpush3.bf16.msra.mxu0 %v2892_v44  ;;  %2209 = vmatprep.mubr.msk.bf16.mxu0 %vm2655_vm1, %v2654_v2 }
 0x5e6   :  { %2205 = vmatprep.subr.bf16.mxu0 %v2654_v2 }
 0x5e7   :  { %v607_v18 = vpop.permute.xlu1 %606 }
 0x5e8   :  { %v609_v19 = vsel %vm251_vm3, %v602_v17, %v607_v18 }
 0x5e9   :  { %v610_v20 = vpack.c.bf16 %v609_v19, %v609_v19  ;;  %2206 = vmatpush3.bf16.msra.mxu0 %v2896_v45 }
 0x5ea   :  { %2207 = vmatprep.subr.bf16.mxu0 %v2654_v2 }
 0x5eb   :  { %v614_v21 = vshll.u32 %v610_v20, 16  ;;  %v612_v22 = vshrl.u32 %v610_v20, 16 }
 0x5ed   :  { %v616_v23 = vrot.slane %v614_v21, 1  ;;  %2208 = vmatpush3.bf16.msra.mxu0 %v2901_v48 }
 0x5ee   :  { %2231 = vmatprep.subr.bf16.mxu0 %v2654_v2 }
 0x5ef   :  { %v617_v24 = vor.u32 %v616_v23, %v612_v22 }
 0x5f1   :  { %2192 = vmatmul.mubr.msk.bf16.vlgmr.msra.gmra.mxu1 %vm410_vm6, %v617_v24 }
 0x5f2   :  { %2214 = vmatpush3.bf16.msra.mxu1 %v2748_v9  ;;  %2217 = vmatprep.mubr.msk.bf16.mxu1 %vm2655_vm1, %v2654_v2 }
 0x5f3   :  { %2215 = vmatprep.subr.bf16.mxu1 %v2654_v2 }
 0x5f6   :  { %2216 = vmatpush3.bf16.msra.mxu1 %v2752_v11 }
 0x5f7   :  { %2221 = vmatprep.subr.bf16.mxu1 %v2654_v2 }
 0x6a4   :  { %v733_v25 = vpop.f32.mrf.mxu0 }
 0x6a5   :  { %v740_v26 = vrot.slane %v733_v25, 6  ;;  %v741_v27 = vrot.slane %v733_v25, 7 }
 0x6a6   :  { %v2201_v28 = vpop.f32.mrf.mxu0 }
 0x6a7   :  { %v744_v29 = vadd.f32 %v740_v26, %v2874_v13  ;;  %v745_v30 = vadd.f32 %v741_v27, %v2876_v14 }
 0x6a8   :  { %v736_v31 = vpop.f32.mrf.mxu0 }
 0x6a9   :  { %2372 = vtanh.f32 %v744_v29  ;;  %v2056_v43 = vmul.f32 -1.442695, %v744_v29  ;;  %v2057_v46 = vmul.f32 -1.442695, %v745_v30 }
 0x6aa   :  { %2374 = vtanh.f32 %v745_v30  ;;  %v2202_v32 = vpop.f32.mrf.mxu0 }
 0x6b1   :  { %v655_v33 = vpop.f32.mrf.mxu1 }
 0x6b2   :  { %v656_v35 = vadd.f32 %v2930_v12, %v655_v33 }
 0x6b3   :  { %v2193_v36 = vpop.f32.mrf.mxu1 }
 0x6b4   :  { %2376 = vtanh.f32 %v656_v35  ;;  %v2054_v47 = vmul.f32 -1.442695, %v656_v35 }
 0x6b5   :  { %v658_v38 = vpop.f32.mrf.mxu1  ;;  %2378 = vpow2.f32 %v2056_v43 }
 0x6b6   :  { %v2373_v39 = vpop.eup %2372  ;;  %2380 = vpow2.f32 %v2057_v46 }
 0x6b7   :  { %v2375_v40 = vpop.eup %2374  ;;  %v2194_v41 = vpop.f32.mrf.mxu1  ;;  %770 = vrot.lane.b32.xlu0 %v2373_v39, %s2657_s29  ;;  %2382 = vpow2.f32 %v2054_v47 }
 0x6b8   :  { %772 = vrot.lane.b32.xlu1 %v2375_v40, %s2657_s29 }
 0x6c1   :  { %v2377_v42 = vpop.eup %2376 }
 0x6c2   :  { %670 = vrot.lane.b32.xlu0 %v2377_v42, %s2657_s29  ;;  %v2379_v49 = vpop.eup %2378 }
 0x6c3   :  { %v2381_v51 = vpop.eup %2380  ;;  %v752_v52 = vadd.f32 1.0, %v2379_v49 }
 0x6c4   :  { %v753_v54 = vadd.f32 1.0, %v2381_v51  ;;  %v2383_v55 = vpop.eup %2382 }
 0x6c5   :  { %2384 = vrcp.f32 %v752_v52  ;;  %v664_v34 = vadd.f32 1.0, %v2383_v55 }
 0x6c6   :  { %2386 = vrcp.f32 %v753_v54 }
 0x6c7   :  { %2388 = vrcp.f32 %v664_v34 }
 0x6d2   :  { %v2385_v37 = vpop.eup %2384 }
 0x6d3   :  { %v2387_v58 = vpop.eup %2386  ;;  %v766_v4 = vmul.f32 %v2385_v37, %v762_v1 }
 0x6d4   :  { %v2389_v62 = vpop.eup %2388  ;;  %v767_v5 = vmul.f32 %v2387_v58, %v763_v3 }
 0x6d5   :  { %v668_v15 = vmul.f32 %v2389_v62, %v2948_v56 }
 0x729   :  { %v771_v57 = vpop.permute.xlu0 %770 }
 0x72a   :  { %v773_v59 = vpop.permute.xlu1 %772  ;;  %v776_v60 = vmul.f32 %v2385_v37, %v771_v57 }
 0x72b   :  { %v777_v61 = vmul.f32 %v2387_v58, %v773_v59 }
 0x72c   :  { %780 = vrot.lane.b32.xlu1 %v776_v60, %s2658_s5 }
 0x72d   :  { %782 = vrot.lane.b32.xlu0 %v777_v61, %s2658_s5 }
 0x734   :  { %v671_v63 = vpop.permute.xlu0 %670 }
 0x735   :  { %v673_v0 = vmul.f32 %v2389_v62, %v671_v63 }
 0x737   :  { %675 = vrot.lane.b32.xlu1 %v673_v0, %s2658_s5 }
 0x79e   :  { %v781_v6 = vpop.permute.xlu1 %780 }
 0x79f   :  { %v783_v7 = vpop.permute.xlu0 %782  ;;  %v2986_v8 = vadd.f32 %v781_v6, %v766_v4 }
 0x7a0   :  { %v2988_v10 = vadd.f32 %v783_v7, %v767_v5 }
 0x7a1   :  { %2390 = vtanh.f32 %v2986_v8 }
 0x7a2   :  { %2392 = vtanh.f32 %v2988_v10 }
 0x7a9   :  { %v676_v16 = vpop.permute.xlu1 %675 }
 0x7aa   :  { %v2993_v17 = vadd.f32 %v676_v16, %v668_v15 }
 0x7ac   :  { %2394 = vtanh.f32 %v2993_v17 }
 0x7ae   :  { %v2391_v50 = vpop.eup %2390 }
 0x7af   :  { %v2393_v53 = vpop.eup %2392  ;;  %792 = vrot.lane.b32.xlu0 %v2391_v50, %s2658_s5 }
 0x7b0   :  { %794 = vrot.lane.b32.xlu1 %v2393_v53, %s2658_s5 }
 0x7b9   :  { %v2395_v18 = vpop.eup %2394 }
 0x7ba   :  { %681 = vrot.lane.b32.xlu0 %v2395_v18, %s2658_s5 }
 0x821   :  { %v793_v19 = vpop.permute.xlu0 %792 }
 0x822   :  { %v795_v20 = vpop.permute.xlu1 %794  ;;  %v798_v21 = vmul.f32 %v2385_v37, %v793_v19 }
 0x823   :  { %v799_v22 = vmul.f32 %v2387_v58, %v795_v20 }
 0x824   :  { %v884_v23 = vpack.c.bf16 %v798_v21, %v798_v21 }
 0x825   :  { %v802_v56 = vrot.slane %v799_v22, 7  ;;  %v885_v24 = vpack.c.bf16 %v799_v22, %v799_v22 }
 0x826   :  { %v888_v25 = vunpack.c.l.b16 %v884_v23 }
 0x827   :  { %v889_v26 = vunpack.c.l.b16 %v885_v24  ;;  %v804_v27 = vsel %vm803_vm8, %v802_v56, %v798_v21  ;;  %v962_v56 = vrot.slane %v2986_v8, 7  ;;  %v963_v24 = vrot.slane %v2988_v10, 7 }
 0x828   :  { %v890_v28 = vrot.slane %v888_v25, 2  ;;  %805 = vrot.lane.b32.xlu0 %v804_v27, %s2659_s11 }
 0x829   :  { %v891_v29 = vrot.slane %v889_v26, 1 }
 0x82b   :  { %v892_v30 = vsel %vm403_vm5, %v891_v29, %v890_v28 }
 0x82c   :  { %v682_v31 = vpop.permute.xlu0 %681  ;;  %v893_v32 = vpack.c.b16 %v892_v30, %v892_v30 }
 0x82d   :  { %v684_v33 = vmul.f32 %v2389_v62, %v682_v31 }
 0x82e   :  { %894 = vrot.lane.b32.xlu1 %v893_v32, %s2659_s11 }
 0x82f   :  { %v809_v35 = vrot.slane %v684_v33, 6 }
 0x832   :  { %810 = vrot.lane.b32.xlu1 %v809_v35, %s2660_s13 }
 0x89a   :  { %v806_v38 = vpop.permute.xlu0 %805 }
 0x8a0   :  { %v895_v36 = vpop.permute.xlu1 %894 }
 0x8a1   :  { %2218 = vmatmul.mubr.msk.bf16.vlgmr.msra.gmra.mxu1 %vm251_vm3, %v895_v36 }
 0x8a2   :  { %2222 = vmatpush3.bf16.msra.mxu1 %v2892_v44  ;;  %2227 = vmatprep.mubr.msk.bf16.mxu1 %vm2655_vm1, %v2654_v2 }
 0x8a3   :  { %2223 = vmatprep.subr.bf16.mxu1 %v2654_v2 }
 0x8a4   :  { %v811_v39 = vpop.permute.xlu1 %810 }
 0x8a5   :  { %v813_v40 = vsel %vm251_vm3, %v806_v38, %v811_v39 }
 0x8a6   :  { %v814_v41 = vpack.c.bf16 %v813_v40, %v813_v40  ;;  %2224 = vmatpush3.bf16.msra.mxu1 %v2896_v45 }
 0x8a7   :  { %2225 = vmatprep.subr.bf16.mxu1 %v2654_v2 }
 0x8a8   :  { %v816_v42 = vrot.slane %v814_v41, 1 }
 0x8aa   :  { %2210 = vmatmul.mubr.msk.bf16.vlgmr.msra.gmra.mxu0 %vm410_vm6, %v816_v42  ;;  %2226 = vmatpush3.bf16.msra.mxu1 %v2901_v48 }
 0x8ab   :  { %2232 = vmatpush3.bf16.msra.mxu0 %v2748_v9  ;;  %2235 = vmatprep.mubr.msk.bf16.mxu0 %vm2655_vm1, %v2654_v2 }
 0x8ac   :  { %2233 = vmatprep.subr.bf16.mxu0 %v2654_v2  ;;  %2249 = vmatprep.subr.bf16.mxu1 %v2654_v2 }
 0x8af   :  { %2234 = vmatpush3.bf16.msra.mxu0 %v2752_v11 }
 0x8b0   :  { %2239 = vmatprep.subr.bf16.mxu0 %v2654_v2 }
 0x961   :  { %v933_v43 = vpop.f32.mrf.mxu1 }
 0x962   :  { %v940_v46 = vrot.slane %v933_v43, 5  ;;  %v941_v47 = vrot.slane %v933_v43, 6 }
 0x963   :  { %v2219_v49 = vpop.f32.mrf.mxu1 }
 0x964   :  { %v944_v51 = vadd.f32 %v940_v46, %v2874_v13  ;;  %v945_v52 = vadd.f32 %v941_v47, %v2876_v14 }
 0x965   :  { %v936_v54 = vpop.f32.mrf.mxu1 }
 0x966   :  { %2396 = vtanh.f32 %v944_v51  ;;  %v2061_v63 = vmul.f32 -1.442695, %v944_v51  ;;  %v2062_v0 = vmul.f32 -1.442695, %v945_v52 }
 0x967   :  { %2398 = vtanh.f32 %v945_v52  ;;  %v2220_v55 = vpop.f32.mrf.mxu1 }
 0x96a   :  { %v854_v34 = vpop.f32.mrf.mxu0 }
 0x96b   :  { %v855_v37 = vadd.f32 %v2930_v12, %v854_v34 }
 0x96c   :  { %v2211_v57 = vpop.f32.mrf.mxu0 }
 0x96d   :  { %2400 = vtanh.f32 %v855_v37  ;;  %v2059_v1 = vmul.f32 -1.442695, %v855_v37 }
 0x96e   :  { %v857_v58 = vpop.f32.mrf.mxu0  ;;  %2402 = vpow2.f32 %v2061_v63 }
 0x96f   :  { %2404 = vpow2.f32 %v2062_v0 }
 0x970   :  { %v2212_v59 = vpop.f32.mrf.mxu0  ;;  %2406 = vpow2.f32 %v2059_v1 }
 0x973   :  { %v2397_v60 = vpop.eup %2396 }
 0x974   :  { %v2399_v61 = vpop.eup %2398  ;;  %970 = vrot.lane.b32.xlu0 %v2397_v60, %s2657_s29 }
 0x975   :  { %972 = vrot.lane.b32.xlu1 %v2399_v61, %s2657_s29 }
 0x97a   :  { %v2401_v62 = vpop.eup %2400 }
 0x97b   :  { %869 = vrot.lane.b32.xlu0 %v2401_v62, %s2657_s29  ;;  %v2403_v3 = vpop.eup %2402 }
 0x97c   :  { %v2405_v4 = vpop.eup %2404  ;;  %v952_v5 = vadd.f32 1.0, %v2403_v3 }
 0x97d   :  { %v953_v6 = vadd.f32 1.0, %v2405_v4  ;;  %v2407_v7 = vpop.eup %2406 }
 0x97e   :  { %2408 = vrcp.f32 %v952_v5  ;;  %v863_v15 = vadd.f32 1.0, %v2407_v7 }
 0x97f   :  { %2410 = vrcp.f32 %v953_v6 }
 0x980   :  { %2412 = vrcp.f32 %v863_v15 }
 0x98b   :  { %v2409_v16 = vpop.eup %2408 }
 0x98c   :  { %v2411_v53 = vpop.eup %2410  ;;  %v966_v25 = vmul.f32 %v2409_v16, %v962_v56 }
 0x98d   :  { %v2413_v21 = vpop.eup %2412  ;;  %v967_v27 = vmul.f32 %v2411_v53, %v963_v24 }
 0x98e   :  { %v867_v31 = vmul.f32 %v2413_v21, %v2993_v17 }
 0x9e6   :  { %v971_v50 = vpop.permute.xlu0 %970 }
 0x9e7   :  { %v973_v18 = vpop.permute.xlu1 %972  ;;  %v976_v19 = vmul.f32 %v2409_v16, %v971_v50 }
 0x9e8   :  { %v977_v20 = vmul.f32 %v2411_v53, %v973_v18 }
 0x9e9   :  { %980 = vrot.lane.b32.xlu1 %v976_v19, %s2658_s5 }
 0x9ea   :  { %982 = vrot.lane.b32.xlu0 %v977_v20, %s2658_s5 }
 0x9ed   :  { %v870_v22 = vpop.permute.xlu0 %869 }
 0x9ee   :  { %v872_v23 = vmul.f32 %v2413_v21, %v870_v22 }
 0x9f0   :  { %874 = vrot.lane.b32.xlu1 %v872_v23, %s2658_s5 }
 0xa5b   :  { %v981_v26 = vpop.permute.xlu1 %980 }
 0xa5c   :  { %v3031_v28 = vadd.f32 %v981_v26, %v966_v25  ;;  %v983_v29 = vpop.permute.xlu0 %982 }
 0xa5d   :  { %v3033_v30 = vadd.f32 %v983_v29, %v967_v27 }
 0xa5e   :  { %2414 = vtanh.f32 %v3031_v28 }
 0xa5f   :  { %2416 = vtanh.f32 %v3033_v30 }
 0xa62   :  { %v875_v32 = vpop.permute.xlu1 %874 }
 0xa63   :  { %v3038_v33 = vadd.f32 %v875_v32, %v867_v31 }
 0xa65   :  { %2418 = vtanh.f32 %v3038_v33 }
 0xa6b   :  { %v2415_v8 = vpop.eup %2414 }
 0xa6c   :  { %v2417_v10 = vpop.eup %2416  ;;  %992 = vrot.lane.b32.xlu0 %v2415_v8, %s2658_s5 }
 0xa6d   :  { %994 = vrot.lane.b32.xlu1 %v2417_v10, %s2658_s5 }
 0xa72   :  { %v2419_v35 = vpop.eup %2418 }
 0xa73   :  { %880 = vrot.lane.b32.xlu0 %v2419_v35, %s2658_s5 }
 0xade   :  { %v993_v36 = vpop.permute.xlu0 %992 }
 0xadf   :  { %v998_v38 = vmul.f32 %v2409_v16, %v993_v36  ;;  %v995_v39 = vpop.permute.xlu1 %994 }
 0xae0   :  { %v999_v40 = vmul.f32 %v2411_v53, %v995_v39 }
 0xae1   :  { %v1090_v41 = vpack.c.bf16 %v998_v38, %v998_v38 }
 0xae2   :  { %v1002_v17 = vrot.slane %v999_v40, 7  ;;  %v1091_v42 = vpack.c.bf16 %v999_v40, %v999_v40 }
 0xae3   :  { %v1094_v43 = vunpack.c.l.b16 %v1090_v41 }
 0xae4   :  { %v1095_v46 = vunpack.c.l.b16 %v1091_v42  ;;  %v1004_v47 = vsel %vm1003_vm9, %v1002_v17, %v998_v38 }
 0xae5   :  { %v1096_v49 = vrot.slane %v1094_v43, 3  ;;  %1005 = vrot.lane.b32.xlu0 %v1004_v47, %s2659_s11  ;;  %v881_v52 = vpop.permute.xlu0 %880  ;;  %v1168_v47 = vrot.slane %v3031_v28, 7 }
 0xae6   :  { %v1097_v51 = vrot.slane %v1095_v46, 2  ;;  %v883_v55 = vmul.f32 %v2413_v21, %v881_v52 }
 0xae8   :  { %v1098_v54 = vsel %vm403_vm5, %v1097_v51, %v1096_v49  ;;  %v1009_v37 = vrot.slane %v883_v55, 5  ;;  %v1169_v49 = vrot.slane %v3033_v30, 7 }
 0xae9   :  { %v1099_v34 = vpack.c.b16 %v1098_v54, %v1098_v54 }
 0xaeb   :  { %1100 = vrot.lane.b32.xlu1 %v1099_v34, %s2659_s11 }
 0xaef   :  { %1010 = vrot.lane.b32.xlu1 %v1009_v37, %s2660_s13 }
 0xb57   :  { %v1006_v58 = vpop.permute.xlu0 %1005 }
 0xb5d   :  { %v1101_v57 = vpop.permute.xlu1 %1100 }
 0xb5e   :  { %2236 = vmatmul.mubr.msk.bf16.vlgmr.msra.gmra.mxu0 %vm251_vm3, %v1101_v57 }
 0xb5f   :  { %2240 = vmatpush3.bf16.msra.mxu0 %v2892_v44  ;;  %2245 = vmatprep.mubr.msk.bf16.mxu0 %vm2655_vm1, %v2654_v2 }
 0xb60   :  { %2241 = vmatprep.subr.bf16.mxu0 %v2654_v2 }
 0xb61   :  { %v1011_v59 = vpop.permute.xlu1 %1010 }
 0xb62   :  { %v1013_v60 = vsel %vm251_vm3, %v1006_v58, %v1011_v59 }
 0xb63   :  { %v1014_v61 = vpack.c.bf16 %v1013_v60, %v1013_v60  ;;  %2242 = vmatpush3.bf16.msra.mxu0 %v2896_v45 }
 0xb64   :  { %2243 = vmatprep.subr.bf16.mxu0 %v2654_v2 }
 0xb65   :  { %v1016_v62 = vshrl.u32 %v1014_v61, 16  ;;  %v1019_v63 = vshll.u32 %v1014_v61, 16 }
 0xb67   :  { %v1018_v0 = vrot.slane %v1016_v62, 1  ;;  %v1021_v1 = vrot.slane %v1019_v63, 2  ;;  %2244 = vmatpush3.bf16.msra.mxu0 %v2901_v48 }
 0xb68   :  { %2267 = vmatprep.subr.bf16.mxu0 %v2654_v2 }
 0xb69   :  { %v1022_v3 = vor.u32 %v1021_v1, %v1018_v0 }
 0xb6b   :  { %2228 = vmatmul.mubr.msk.bf16.vlgmr.msra.gmra.mxu1 %vm410_vm6, %v1022_v3 }
 0xb6c   :  { %2250 = vmatpush3.bf16.msra.mxu1 %v2748_v9  ;;  %2253 = vmatprep.mubr.msk.bf16.mxu1 %vm2655_vm1, %v2654_v2 }
 0xb6d   :  { %2251 = vmatprep.subr.bf16.mxu1 %v2654_v2 }
 0xb70   :  { %2252 = vmatpush3.bf16.msra.mxu1 %v2752_v11 }
 0xb71   :  { %2257 = vmatprep.subr.bf16.mxu1 %v2654_v2 }
 0xc1e   :  { %v1139_v4 = vpop.f32.mrf.mxu0 }
 0xc1f   :  { %v1146_v5 = vrot.slane %v1139_v4, 4  ;;  %v1147_v6 = vrot.slane %v1139_v4, 5 }
 0xc20   :  { %v2237_v7 = vpop.f32.mrf.mxu0 }
 0xc21   :  { %v1150_v15 = vadd.f32 %v1146_v5, %v2874_v13  ;;  %v1151_v16 = vadd.f32 %v1147_v6, %v2876_v14 }
 0xc22   :  { %v1142_v50 = vpop.f32.mrf.mxu0 }
 0xc23   :  { %2420 = vtanh.f32 %v1150_v15  ;;  %v2066_v25 = vmul.f32 -1.442695, %v1150_v15  ;;  %v2067_v26 = vmul.f32 -1.442695, %v1151_v16 }
 0xc24   :  { %2422 = vtanh.f32 %v1151_v16  ;;  %v2238_v53 = vpop.f32.mrf.mxu0 }
 0xc2b   :  { %v1060_v18 = vpop.f32.mrf.mxu1 }
 0xc2c   :  { %v1061_v19 = vadd.f32 %v2930_v12, %v1060_v18 }
 0xc2d   :  { %v2229_v20 = vpop.f32.mrf.mxu1 }
 0xc2e   :  { %2424 = vtanh.f32 %v1061_v19  ;;  %v2064_v27 = vmul.f32 -1.442695, %v1061_v19 }
 0xc2f   :  { %v1063_v21 = vpop.f32.mrf.mxu1  ;;  %2426 = vpow2.f32 %v2066_v25 }
 0xc30   :  { %v2421_v22 = vpop.eup %2420  ;;  %2428 = vpow2.f32 %v2067_v26 }
 0xc31   :  { %v2423_v23 = vpop.eup %2422  ;;  %v2230_v56 = vpop.f32.mrf.mxu1  ;;  %1176 = vrot.lane.b32.xlu0 %v2421_v22, %s2657_s29  ;;  %2430 = vpow2.f32 %v2064_v27 }
 0xc32   :  { %1178 = vrot.lane.b32.xlu1 %v2423_v23, %s2657_s29 }
 0xc3b   :  { %v2425_v24 = vpop.eup %2424 }
 0xc3c   :  { %1075 = vrot.lane.b32.xlu0 %v2425_v24, %s2657_s29  ;;  %v2427_v29 = vpop.eup %2426 }
 0xc3d   :  { %v2429_v31 = vpop.eup %2428  ;;  %v1158_v32 = vadd.f32 1.0, %v2427_v29 }
 0xc3e   :  { %v1159_v8 = vadd.f32 1.0, %v2429_v31  ;;  %v2431_v10 = vpop.eup %2430 }
 0xc3f   :  { %2432 = vrcp.f32 %v1158_v32  ;;  %v1069_v35 = vadd.f32 1.0, %v2431_v10 }
 0xc40   :  { %2434 = vrcp.f32 %v1159_v8 }
 0xc41   :  { %2436 = vrcp.f32 %v1069_v35 }
 0xc4c   :  { %v2433_v36 = vpop.eup %2432 }
 0xc4d   :  { %v2435_v39 = vpop.eup %2434  ;;  %v1172_v51 = vmul.f32 %v2433_v36, %v1168_v47 }
 0xc4e   :  { %v2437_v42 = vpop.eup %2436  ;;  %v1173_v52 = vmul.f32 %v2435_v39, %v1169_v49 }
 0xc4f   :  { %v1073_v57 = vmul.f32 %v2437_v42, %v3038_v33 }
 0xca3   :  { %v1177_v38 = vpop.permute.xlu0 %1176 }
 0xca4   :  { %v1179_v40 = vpop.permute.xlu1 %1178  ;;  %v1182_v41 = vmul.f32 %v2433_v36, %v1177_v38 }
 0xca5   :  { %v1183_v17 = vmul.f32 %v2435_v39, %v1179_v40 }
 0xca6   :  { %1186 = vrot.lane.b32.xlu1 %v1182_v41, %s2658_s5 }
 0xca7   :  { %1188 = vrot.lane.b32.xlu0 %v1183_v17, %s2658_s5 }
 0xcae   :  { %v1076_v43 = vpop.permute.xlu0 %1075 }
 0xcaf   :  { %v1078_v46 = vmul.f32 %v2437_v42, %v1076_v43 }
 0xcb1   :  { %1080 = vrot.lane.b32.xlu1 %v1078_v46, %s2658_s5 }
 0xd18   :  { %v1187_v54 = vpop.permute.xlu1 %1186 }
 0xd19   :  { %v1189_v55 = vpop.permute.xlu0 %1188  ;;  %v3076_v34 = vadd.f32 %v1187_v54, %v1172_v51 }
 0xd1a   :  { %v3078_v37 = vadd.f32 %v1189_v55, %v1173_v52 }
 0xd1b   :  { %2438 = vtanh.f32 %v3076_v34 }
 0xd1c   :  { %2440 = vtanh.f32 %v3078_v37 }
 0xd23   :  { %v1081_v58 = vpop.permute.xlu1 %1080 }
 0xd24   :  { %v3083_v59 = vadd.f32 %v1081_v58, %v1073_v57 }
 0xd26   :  { %2442 = vtanh.f32 %v3083_v59 }
 0xd28   :  { %v2439_v28 = vpop.eup %2438 }
 0xd29   :  { %v2441_v30 = vpop.eup %2440  ;;  %1198 = vrot.lane.b32.xlu0 %v2439_v28, %s2658_s5 }
 0xd2a   :  { %1200 = vrot.lane.b32.xlu1 %v2441_v30, %s2658_s5 }
 0xd33   :  { %v2443_v60 = vpop.eup %2442 }
 0xd34   :  { %1086 = vrot.lane.b32.xlu0 %v2443_v60, %s2658_s5 }
 0xd9b   :  { %v1199_v61 = vpop.permute.xlu0 %1198 }
 0xd9c   :  { %v1201_v62 = vpop.permute.xlu1 %1200  ;;  %v1204_v63 = vmul.f32 %v2433_v36, %v1199_v61 }
 0xd9d   :  { %v1205_v0 = vmul.f32 %v2435_v39, %v1201_v62 }
 0xd9e   :  { %v1290_v1 = vpack.c.bf16 %v1204_v63, %v1204_v63 }
 0xd9f   :  { %v1208_v33 = vrot.slane %v1205_v0, 7  ;;  %v1291_v3 = vpack.c.bf16 %v1205_v0, %v1205_v0 }
 0xda0   :  { %v1294_v4 = vunpack.c.l.b16 %v1290_v1  ;;  %v1368_v1 = vrot.slane %v3076_v34, 7 }
 0xda1   :  { %v1295_v5 = vunpack.c.l.b16 %v1291_v3  ;;  %v1210_v6 = vsel %vm1209_vm10, %v1208_v33, %v1204_v63  ;;  %v1369_v33 = vrot.slane %v3078_v37, 7 }
 0xda2   :  { %v1296_v7 = vrot.slane %v1294_v4, 4  ;;  %1211 = vrot.lane.b32.xlu0 %v1210_v6, %s2659_s11 }
 0xda3   :  { %v1297_v15 = vrot.slane %v1295_v5, 3 }
 0xda5   :  { %v1298_v16 = vsel %vm403_vm5, %v1297_v15, %v1296_v7 }
 0xda6   :  { %v1087_v50 = vpop.permute.xlu0 %1086  ;;  %v1299_v53 = vpack.c.b16 %v1298_v16, %v1298_v16 }
 0xda7   :  { %v1089_v18 = vmul.f32 %v2437_v42, %v1087_v50 }
 0xda8   :  { %1300 = vrot.lane.b32.xlu1 %v1299_v53, %s2659_s11 }
 0xda9   :  { %v1215_v19 = vrot.slane %v1089_v18, 4 }
 0xdac   :  { %1216 = vrot.lane.b32.xlu1 %v1215_v19, %s2660_s13 }
 0xe14   :  { %v1212_v21 = vpop.permute.xlu0 %1211 }
 0xe1a   :  { %v1301_v20 = vpop.permute.xlu1 %1300 }
 0xe1b   :  { %2254 = vmatmul.mubr.msk.bf16.vlgmr.msra.gmra.mxu1 %vm251_vm3, %v1301_v20 }
 0xe1c   :  { %2258 = vmatpush3.bf16.msra.mxu1 %v2892_v44  ;;  %2263 = vmatprep.mubr.msk.bf16.mxu1 %vm2655_vm1, %v2654_v2 }
 0xe1d   :  { %2259 = vmatprep.subr.bf16.mxu1 %v2654_v2 }
 0xe1e   :  { %v1217_v22 = vpop.permute.xlu1 %1216 }
 0xe1f   :  { %v1219_v23 = vsel %vm251_vm3, %v1212_v21, %v1217_v22 }
 0xe20   :  { %v1220_v56 = vpack.c.bf16 %v1219_v23, %v1219_v23  ;;  %2260 = vmatpush3.bf16.msra.mxu1 %v2896_v45 }
 0xe21   :  { %2261 = vmatprep.subr.bf16.mxu1 %v2654_v2 }
 0xe22   :  { %v1222_v24 = vrot.slane %v1220_v56, 2 }
 0xe24   :  { %2246 = vmatmul.mubr.msk.bf16.vlgmr.msra.gmra.mxu0 %vm410_vm6, %v1222_v24  ;;  %2262 = vmatpush3.bf16.msra.mxu1 %v2901_v48 }
 0xe25   :  { %2268 = vmatpush3.bf16.msra.mxu0 %v2748_v9  ;;  %2271 = vmatprep.mubr.msk.bf16.mxu0 %vm2655_vm1, %v2654_v2 }
 0xe26   :  { %2269 = vmatprep.subr.bf16.mxu0 %v2654_v2  ;;  %2285 = vmatprep.subr.bf16.mxu1 %v2654_v2 }
 0xe29   :  { %2270 = vmatpush3.bf16.msra.mxu0 %v2752_v11 }
 0xe2a   :  { %2275 = vmatprep.subr.bf16.mxu0 %v2654_v2 }
 0xedb   :  { %v1339_v25 = vpop.f32.mrf.mxu1 }
 0xedc   :  { %v1346_v26 = vrot.slane %v1339_v25, 3  ;;  %v1347_v27 = vrot.slane %v1339_v25, 4 }
 0xedd   :  { %v2255_v29 = vpop.f32.mrf.mxu1 }
 0xede   :  { %v1350_v31 = vadd.f32 %v1346_v26, %v2874_v13  ;;  %v1351_v32 = vadd.f32 %v1347_v27, %v2876_v14 }
 0xedf   :  { %v1342_v8 = vpop.f32.mrf.mxu1 }
 0xee0   :  { %2444 = vtanh.f32 %v1350_v31  ;;  %v2071_v43 = vmul.f32 -1.442695, %v1350_v31  ;;  %v2072_v46 = vmul.f32 -1.442695, %v1351_v32 }
 0xee1   :  { %2446 = vtanh.f32 %v1351_v32  ;;  %v2256_v10 = vpop.f32.mrf.mxu1 }
 0xee4   :  { %v1260_v35 = vpop.f32.mrf.mxu0 }
 0xee5   :  { %v1261_v36 = vadd.f32 %v2930_v12, %v1260_v35 }
 0xee6   :  { %v2247_v38 = vpop.f32.mrf.mxu0 }
 0xee7   :  { %2448 = vtanh.f32 %v1261_v36  ;;  %v2069_v47 = vmul.f32 -1.442695, %v1261_v36 }
 0xee8   :  { %v1263_v39 = vpop.f32.mrf.mxu0  ;;  %2450 = vpow2.f32 %v2071_v43 }
 0xee9   :  { %2452 = vpow2.f32 %v2072_v46 }
 0xeea   :  { %v2248_v40 = vpop.f32.mrf.mxu0  ;;  %2454 = vpow2.f32 %v2069_v47 }
 0xeed   :  { %v2445_v41 = vpop.eup %2444 }
 0xeee   :  { %v2447_v17 = vpop.eup %2446  ;;  %1376 = vrot.lane.b32.xlu0 %v2445_v41, %s2657_s29 }
 0xeef   :  { %1378 = vrot.lane.b32.xlu1 %v2447_v17, %s2657_s29 }
 0xef4   :  { %v2449_v42 = vpop.eup %2448 }
 0xef5   :  { %1275 = vrot.lane.b32.xlu0 %v2449_v42, %s2657_s29  ;;  %v2451_v12 = vpop.eup %2450 }
 0xef6   :  { %v2453_v49 = vpop.eup %2452  ;;  %v1358_v51 = vadd.f32 1.0, %v2451_v12 }
 0xef7   :  { %v1359_v52 = vadd.f32 1.0, %v2453_v49  ;;  %v2455_v54 = vpop.eup %2454 }
 0xef8   :  { %2456 = vrcp.f32 %v1358_v51  ;;  %v1269_v55 = vadd.f32 1.0, %v2455_v54 }
 0xef9   :  { %2458 = vrcp.f32 %v1359_v52 }
 0xefa   :  { %2460 = vrcp.f32 %v1269_v55 }
 0xf05   :  { %v2457_v57 = vpop.eup %2456 }
 0xf06   :  { %v2459_v28 = vpop.eup %2458  ;;  %v1372_v3 = vmul.f32 %v2457_v57, %v1368_v1 }
 0xf07   :  { %v2461_v62 = vpop.eup %2460  ;;  %v1373_v5 = vmul.f32 %v2459_v28, %v1369_v33 }
 0xf08   :  { %v1273_v16 = vmul.f32 %v2461_v62, %v3083_v59 }
 0xf60   :  { %v1377_v58 = vpop.permute.xlu0 %1376 }
 0xf61   :  { %v1379_v30 = vpop.permute.xlu1 %1378  ;;  %v1382_v60 = vmul.f32 %v2457_v57, %v1377_v58 }
 0xf62   :  { %v1383_v61 = vmul.f32 %v2459_v28, %v1379_v30 }
 0xf63   :  { %1386 = vrot.lane.b32.xlu1 %v1382_v60, %s2658_s5 }
 0xf64   :  { %1388 = vrot.lane.b32.xlu0 %v1383_v61, %s2658_s5 }
 0xf67   :  { %v1276_v63 = vpop.permute.xlu0 %1275 }
 0xf68   :  { %v1278_v0 = vmul.f32 %v2461_v62, %v1276_v63 }
 0xf6a   :  { %1280 = vrot.lane.b32.xlu1 %v1278_v0, %s2658_s5 }
 0xfd5   :  { %v1387_v4 = vpop.permute.xlu1 %1386 }
 0xfd6   :  { %v3121_v6 = vadd.f32 %v1387_v4, %v1372_v3  ;;  %v1389_v7 = vpop.permute.xlu0 %1388 }
 0xfd7   :  { %v3123_v15 = vadd.f32 %v1389_v7, %v1373_v5 }
 0xfd8   :  { %2462 = vtanh.f32 %v3121_v6 }
 0xfd9   :  { %2464 = vtanh.f32 %v3123_v15 }
 0xfdc   :  { %v1281_v50 = vpop.permute.xlu1 %1280 }
 0xfdd   :  { %v3128_v53 = vadd.f32 %v1281_v50, %v1273_v16 }
 0xfdf   :  { %2466 = vtanh.f32 %v3128_v53 }
 0xfe5   :  { %v2463_v34 = vpop.eup %2462 }
 0xfe6   :  { %v2465_v37 = vpop.eup %2464  ;;  %1398 = vrot.lane.b32.xlu0 %v2463_v34, %s2658_s5 }
 0xfe7   :  { %1400 = vrot.lane.b32.xlu1 %v2465_v37, %s2658_s5 }
 0xfec   :  { %v2467_v18 = vpop.eup %2466 }
 0xfed   :  { %1286 = vrot.lane.b32.xlu0 %v2467_v18, %s2658_s5 }
0x1058   :  { %v1399_v19 = vpop.permute.xlu0 %1398 }
0x1059   :  { %v1404_v20 = vmul.f32 %v2457_v57, %v1399_v19  ;;  %v1401_v21 = vpop.permute.xlu1 %1400 }
0x105a   :  { %v1405_v22 = vmul.f32 %v2459_v28, %v1401_v21  ;;  %v3160_v28 = vld [vmem:[%s3251_s7] ss:$0 sm:$0xff] }
0x105b   :  { %v1496_v23 = vpack.c.bf16 %v1404_v20, %v1404_v20 }
0x105c   :  { %v1408_v59 = vrot.slane %v1405_v22, 7  ;;  %v1497_v56 = vpack.c.bf16 %v1405_v22, %v1405_v22 }
0x105d   :  { %v1500_v24 = vunpack.c.l.b16 %v1496_v23 }
0x105e   :  { %v1501_v25 = vunpack.c.l.b16 %v1497_v56  ;;  %v1410_v26 = vsel %vm1409_vm11, %v1408_v59, %v1404_v20 }
0x105f   :  { %v1502_v27 = vrot.slane %v1500_v24, 5  ;;  %1411 = vrot.lane.b32.xlu1 %v1410_v26, %s2659_s11  ;;  %v1287_v29 = vpop.permute.xlu0 %1286  ;;  %v1574_v24 = vrot.slane %v3121_v6, 7 }
0x1060   :  { %v1503_v31 = vrot.slane %v1501_v25, 4  ;;  %v1289_v32 = vmul.f32 %v2461_v62, %v1287_v29  ;;  %v1575_v25 = vrot.slane %v3123_v15, 7 }
0x1062   :  { %v1415_v8 = vrot.slane %v1289_v32, 3  ;;  %v1504_v10 = vsel %vm403_vm5, %v1503_v31, %v1502_v27 }
0x1063   :  { %v1505_v35 = vpack.c.b16 %v1504_v10, %v1504_v10 }
0x1064   :  { %1416 = vrot.lane.b32.xlu0 %v1415_v8, %s2660_s13 }
0x1065   :  { %1506 = vrot.lane.b32.xlu1 %v1505_v35, %s2659_s11 }
0x10d1   :  { %v1412_v36 = vpop.permute.xlu1 %1411 }
0x10d6   :  { %v1417_v38 = vpop.permute.xlu0 %1416 }
0x10d7   :  { %v1507_v39 = vpop.permute.xlu1 %1506  ;;  %v1419_v40 = vsel %vm251_vm3, %v1412_v36, %v1417_v38 }
0x10d8   :  { %v1420_v41 = vpack.c.bf16 %v1419_v40, %v1419_v40  ;;  %2272 = vmatmul.mubr.msk.bf16.vlgmr.msra.gmra.mxu0 %vm251_vm3, %v1507_v39 }
0x10d9   :  { %2276 = vmatpush3.bf16.msra.mxu0 %v2892_v44  ;;  %2281 = vmatprep.mubr.msk.bf16.mxu0 %vm2655_vm1, %v2654_v2 }
0x10da   :  { %v1422_v17 = vshrl.u32 %v1420_v41, 16  ;;  %v1425_v42 = vshll.u32 %v1420_v41, 16  ;;  %2277 = vmatprep.subr.bf16.mxu0 %v2654_v2 }
0x10dc   :  { %v1424_v43 = vrot.slane %v1422_v17, 2  ;;  %v1427_v46 = vrot.slane %v1425_v42, 3 }
0x10dd   :  { %2278 = vmatpush3.bf16.msra.mxu0 %v2896_v45 }
0x10de   :  { %v1428_v47 = vor.u32 %v1427_v46, %v1424_v43  ;;  %2279 = vmatprep.subr.bf16.mxu0 %v2654_v2 }
0x10e0   :  { %2264 = vmatmul.mubr.msk.bf16.vlgmr.msra.gmra.mxu1 %vm410_vm6, %v1428_v47 }
0x10e1   :  { %2286 = vmatpush3.bf16.msra.mxu1 %v2748_v9  ;;  %2289 = vmatprep.mubr.msk.bf16.mxu1 %vm2655_vm1, %v2654_v2 }
0x10e2   :  { %2287 = vmatprep.subr.bf16.mxu1 %v2654_v2  ;;  %2280 = vmatpush3.bf16.msra.mxu0 %v2901_v48 }
0x10e3   :  { %2303 = vmatprep.subr.mxu0 %v2654_v2 }
0x10e5   :  { %2288 = vmatpush3.bf16.msra.mxu1 %v2752_v11 }
0x10e6   :  { %2293 = vmatprep.subr.bf16.mxu1 %v2654_v2 }
0x1198   :  { %v1545_v12 = vpop.f32.mrf.mxu0 }
0x1199   :  { %v1552_v49 = vrot.slane %v1545_v12, 2  ;;  %v1553_v51 = vrot.slane %v1545_v12, 3 }
0x119a   :  { %v2273_v52 = vpop.f32.mrf.mxu0 }
0x119b   :  { %v1556_v54 = vadd.f32 %v1552_v49, %v2874_v13  ;;  %v1557_v9 = vadd.f32 %v1553_v51, %v2876_v14 }
0x119c   :  { %v1548_v55 = vpop.f32.mrf.mxu0 }
0x119d   :  { %2468 = vtanh.f32 %v1556_v54  ;;  %v2076_v1 = vmul.f32 -1.442695, %v1556_v54  ;;  %v2077_v33 = vmul.f32 -1.442695, %v1557_v9 }
0x119e   :  { %2470 = vtanh.f32 %v1557_v9  ;;  %v2274_v57 = vpop.f32.mrf.mxu0 }
0x11a0   :  { %v1466_v58 = vpop.f32.mrf.mxu1 }
0x11a1   :  { %v1467_v11 = vadd.f32 %v3160_v28, %v1466_v58 }
0x11a2   :  { %v2265_v30 = vpop.f32.mrf.mxu1 }
0x11a3   :  { %2472 = vtanh.f32 %v1467_v11  ;;  %v2074_v3 = vmul.f32 -1.442695, %v1467_v11 }
0x11a4   :  { %v1469_v60 = vpop.f32.mrf.mxu1  ;;  %2474 = vpow2.f32 %v2076_v1 }
0x11a5   :  { %2476 = vpow2.f32 %v2077_v33 }
0x11a6   :  { %v2266_v61 = vpop.f32.mrf.mxu1  ;;  %2478 = vpow2.f32 %v2074_v3 }
0x11aa   :  { %v2469_v62 = vpop.eup %2468 }
0x11ab   :  { %v2471_v63 = vpop.eup %2470  ;;  %1582 = vrot.lane.b32.xlu0 %v2469_v62, %s2657_s29 }
0x11ac   :  { %1584 = vrot.lane.b32.xlu1 %v2471_v63, %s2657_s29 }
0x11b0   :  { %v2473_v0 = vpop.eup %2472 }
0x11b1   :  { %1481 = vrot.lane.b32.xlu0 %v2473_v0, %s2657_s29  ;;  %v2475_v4 = vpop.eup %2474 }
0x11b2   :  { %v2477_v5 = vpop.eup %2476  ;;  %v1564_v7 = vadd.f32 1.0, %v2475_v4 }
0x11b3   :  { %v1565_v16 = vadd.f32 1.0, %v2477_v5  ;;  %v2479_v50 = vpop.eup %2478 }
0x11b4   :  { %2480 = vrcp.f32 %v1564_v7  ;;  %v1475_v34 = vadd.f32 1.0, %v2479_v50 }
0x11b5   :  { %2482 = vrcp.f32 %v1565_v16 }
0x11b6   :  { %2484 = vrcp.f32 %v1475_v34 }
0x11c1   :  { %v2481_v37 = vpop.eup %2480 }
0x11c2   :  { %v2483_v19 = vpop.eup %2482  ;;  %v1578_v26 = vmul.f32 %v2481_v37, %v1574_v24 }
0x11c3   :  { %v2485_v23 = vpop.eup %2484  ;;  %v1579_v27 = vmul.f32 %v2483_v19, %v1575_v25 }
0x11c4   :  { %v1479_v10 = vmul.f32 %v2485_v23, %v3128_v53 }
0x121d   :  { %v1583_v18 = vpop.permute.xlu0 %1582 }
0x121e   :  { %v1585_v20 = vpop.permute.xlu1 %1584  ;;  %v1588_v21 = vmul.f32 %v2481_v37, %v1583_v18 }
0x121f   :  { %v1589_v22 = vmul.f32 %v2483_v19, %v1585_v20 }
0x1220   :  { %1592 = vrot.lane.b32.xlu1 %v1588_v21, %s2658_s5 }
0x1221   :  { %1594 = vrot.lane.b32.xlu0 %v1589_v22, %s2658_s5 }
0x1223   :  { %v1482_v59 = vpop.permute.xlu0 %1481 }
0x1224   :  { %v1484_v56 = vmul.f32 %v2485_v23, %v1482_v59 }
0x1226   :  { %1486 = vrot.lane.b32.xlu1 %v1484_v56, %s2658_s5 }
0x1292   :  { %v1593_v29 = vpop.permute.xlu1 %1592 }
0x1293   :  { %v1595_v31 = vpop.permute.xlu0 %1594  ;;  %v3171_v32 = vadd.f32 %v1593_v29, %v1578_v26 }
0x1294   :  { %v3173_v8 = vadd.f32 %v1595_v31, %v1579_v27 }
0x1295   :  { %2486 = vtanh.f32 %v3171_v32 }
0x1296   :  { %2488 = vtanh.f32 %v3173_v8 }
0x1298   :  { %v1487_v35 = vpop.permute.xlu1 %1486 }
0x1299   :  { %v3178_v36 = vadd.f32 %v1487_v35, %v1479_v10 }
0x129b   :  { %2490 = vtanh.f32 %v3178_v36 }
0x12a2   :  { %v2487_v6 = vpop.eup %2486 }
0x12a3   :  { %v2489_v15 = vpop.eup %2488  ;;  %1604 = vrot.lane.b32.xlu0 %v2487_v6, %s2658_s5 }
0x12a4   :  { %1606 = vrot.lane.b32.xlu1 %v2489_v15, %s2658_s5  ;;  %v1775_v15 = vrot.slane %v3173_v8, 7 }
0x12a8   :  { %v2491_v38 = vpop.eup %2490 }
0x12a9   :  { %1492 = vrot.lane.b32.xlu0 %v2491_v38, %s2658_s5 }
0x1315   :  { %v1605_v39 = vpop.permute.xlu0 %1604 }
0x1316   :  { %v1607_v40 = vpop.permute.xlu1 %1606  ;;  %v1610_v41 = vmul.f32 %v2481_v37, %v1605_v39 }
0x1317   :  { %v1611_v17 = vmul.f32 %v2483_v19, %v1607_v40 }
0x1318   :  { %v1696_v42 = vpack.c.bf16 %v1610_v41, %v1610_v41 }
0x1319   :  { %v1614_v53 = vrot.slane %v1611_v17, 7  ;;  %v1697_v43 = vpack.c.bf16 %v1611_v17, %v1611_v17 }
0x131a   :  { %v1700_v46 = vunpack.c.l.b16 %v1696_v42  ;;  %v1774_v42 = vrot.slane %v3171_v32, 7 }
0x131b   :  { %v1701_v47 = vunpack.c.l.b16 %v1697_v43  ;;  %v1616_v12 = vsel %vm1615_vm12, %v1614_v53, %v1610_v41  ;;  %v1493_v49 = vpop.permute.xlu0 %1492 }
0x131c   :  { %v1702_v51 = vrot.slane %v1700_v46, 6  ;;  %1617 = vrot.lane.b32.xlu1 %v1616_v12, %s2659_s11  ;;  %v1495_v52 = vmul.f32 %v2485_v23, %v1493_v49 }
0x131d   :  { %v1703_v54 = vrot.slane %v1701_v47, 5 }
0x131e   :  { %v1621_v9 = vrot.slane %v1495_v52, 2 }
0x131f   :  { %v1704_v55 = vsel %vm403_vm5, %v1703_v54, %v1702_v51 }
0x1320   :  { %v1705_v57 = vpack.c.b16 %v1704_v55, %v1704_v55  ;;  %1622 = vrot.lane.b32.xlu0 %v1621_v9, %s2660_s13 }
0x1322   :  { %1706 = vrot.lane.b32.xlu1 %v1705_v57, %s2659_s11 }
0x138e   :  { %v1618_v58 = vpop.permute.xlu1 %1617 }
0x1392   :  { %v1623_v11 = vpop.permute.xlu0 %1622 }
0x1393   :  { %v1625_v30 = vsel %vm251_vm3, %v1618_v58, %v1623_v11 }
0x1394   :  { %v1707_v60 = vpop.permute.xlu1 %1706  ;;  %v1626_v61 = vpack.c.bf16 %v1625_v30, %v1625_v30 }
0x1395   :  { %2290 = vmatmul.mubr.msk.bf16.vlgmr.msra.gmra.mxu1 %vm251_vm3, %v1707_v60 }
0x1396   :  { %v1628_v62 = vrot.slane %v1626_v61, 3  ;;  %2294 = vmatpush3.bf16.msra.mxu1 %v2892_v44  ;;  %2299 = vmatprep.mubr.msk.bf16.mxu1 %vm2655_vm1, %v2654_v2 }
0x1397   :  { %2295 = vmatprep.subr.bf16.mxu1 %v2654_v2 }
0x1398   :  { %2282 = vmatmul.mubr.msk.bf16.vlgmr.msra.gmra.mxu0 %vm410_vm6, %v1628_v62 }
0x1399   :  { %2309 = vmatprep.mubr.msk.f32.mxu0 %vm2655_vm1, %v2654_v2 }
0x139a   :  { %2296 = vmatpush3.bf16.msra.mxu1 %v2896_v45 }
0x139b   :  { %2297 = vmatprep.subr.bf16.mxu1 %v2654_v2 }
0x139e   :  { %2298 = vmatpush3.bf16.msra.mxu1 %v2901_v48 }
0x1455   :  { %v1745_v63 = vpop.f32.mrf.mxu1 }
0x1456   :  { %v1753_v0 = vrot.slane %v1745_v63, 2  ;;  %v1752_v5 = vrot.slane %v1745_v63, 1 }
0x1457   :  { %v2291_v1 = vpop.f32.mrf.mxu1 }
0x1458   :  { %v1757_v44 = vadd.f32 %v1753_v0, %v2876_v14  ;;  %v1666_v33 = vpop.f32.mrf.mxu0  ;;  %v1756_v45 = vadd.f32 %v1752_v5, %v2874_v13 }
0x1459   :  { %v1748_v3 = vpop.f32.mrf.mxu1  ;;  %v1667_v7 = vadd.f32 %v3160_v28, %v1666_v33 }
0x145a   :  { %v2283_v4 = vpop.f32.mrf.mxu0  ;;  %2492 = vtanh.f32 %v1757_v44  ;;  %v2082_v18 = vmul.f32 -1.442695, %v1757_v44  ;;  %v2081_v20 = vmul.f32 -1.442695, %v1756_v45 }
0x145b   :  { %v2292_v16 = vpop.f32.mrf.mxu1  ;;  %2494 = vtanh.f32 %v1667_v7  ;;  %v2079_v19 = vmul.f32 -1.442695, %v1667_v7 }
0x145c   :  { %v1669_v50 = vpop.f32.mrf.mxu0  ;;  %2496 = vtanh.f32 %v1756_v45 }
0x145d   :  { %2498 = vpow2.f32 %v2082_v18 }
0x145e   :  { %v2284_v34 = vpop.f32.mrf.mxu0  ;;  %2500 = vpow2.f32 %v2079_v19 }
0x145f   :  { %2502 = vpow2.f32 %v2081_v20 }
0x1467   :  { %v2493_v48 = vpop.eup %2492 }
0x1468   :  { %1784 = vrot.lane.b32.xlu1 %v2493_v48, %s2657_s29  ;;  %v2495_v37 = vpop.eup %2494 }
0x1469   :  { %1681 = vrot.lane.b32.xlu0 %v2495_v37, %s2657_s29  ;;  %v2497_v14 = vpop.eup %2496 }
0x146a   :  { %v2499_v21 = vpop.eup %2498 }
0x146b   :  { %v1765_v22 = vadd.f32 1.0, %v2499_v21  ;;  %v2501_v13 = vpop.eup %2500 }
0x146c   :  { %v1675_v23 = vadd.f32 1.0, %v2501_v13  ;;  %v2503_v59 = vpop.eup %2502  ;;  %v1906_v13 = vld [vmem:[%s3252_s8 + $0x10] sm:$0xf] }
0x146d   :  { %1782 = vrot.lane.b32.xlu0 %v2497_v14, %s2657_s29  ;;  %2504 = vrcp.f32 %v1765_v22  ;;  %v1764_v56 = vadd.f32 1.0, %v2503_v59  ;;  %2304 = vmatpush3.msk.msra.mxu0 %vm414_vm4, %v1906_v13  ;;  %v1904_v59 = vld [vmem:[%s3252_s8] sm:$0xff] }
0x146e   :  { %2506 = vrcp.f32 %v1675_v23  ;;  %v1905_v23 = vld [vmem:[%s3252_s8 + $0x8] sm:$0xff]  ;;  %2305 = vmatprep.subr.mxu0 %v2654_v2  ;;  %s2000_s8 = sshll.u32 %s2661_s4, 4  ;;  %s2001_s8 = int_to_ptr.vmem [resolvable:$true] %s2000_s8 }
0x146f   :  { %2508 = vrcp.f32 %v1764_v56  ;;  %2306 = vmatpush3.msra.mxu0 %v1905_v23  ;;  %s2617_s22 = scalar_lea.vmem %s2001_s8, 32  ;;  %p2622_p12 = scmp.lt.s32.totalorder %s2001_s8, %s2001_s8 }
0x1470   :  { %2307 = vmatprep.subr.mxu0 %v2654_v2  ;;  %p2618_p11 = scmp.ne.s32.totalorder %s2001_s8, %s2617_s22  ;;  %p2623_p13 = scmp.lt.s32.totalorder %s2617_s22, %s2617_s22 }
0x1471   :  { %2308 = vmatpush3.msra.mxu0 %v1904_v59 }
0x1472   :  { %p2624_p0 = por %p2623_p13, %p2622_p12 }
0x1474   :  { %p2625_p1 = pnand %p2624_p0, %p2618_p11 }
0x147a   :  { %v2505_v24 = vpop.eup %2504 }
0x147b   :  { %v2507_v27 = vpop.eup %2506  ;;  %v1779_v38 = vmul.f32 %v2505_v24, %v1775_v15 }
0x147c   :  { %v2509_v10 = vpop.eup %2508  ;;  %v1679_v41 = vmul.f32 %v2507_v27, %v3178_v36 }
0x147d   :  { %v1778_v43 = vmul.f32 %v2509_v10, %v1774_v42 }
0x14da   :  { %v1785_v25 = vpop.permute.xlu1 %1784 }
0x14db   :  { %v1789_v26 = vmul.f32 %v2505_v24, %v1785_v25  ;;  %v1682_v29 = vpop.permute.xlu0 %1681 }
0x14dc   :  { %v1684_v31 = vmul.f32 %v2507_v27, %v1682_v29 }
0x14dd   :  { %1794 = vrot.lane.b32.xlu0 %v1789_v26, %s2658_s5 }
0x14de   :  { %1686 = vrot.lane.b32.xlu1 %v1684_v31, %s2658_s5 }
0x14df   :  { %v1783_v35 = vpop.permute.xlu0 %1782 }
0x14e0   :  { %v1788_v6 = vmul.f32 %v2509_v10, %v1783_v35 }
0x14e2   :  { %1792 = vrot.lane.b32.xlu1 %v1788_v6, %s2658_s5 }
0x154f   :  { %v1795_v39 = vpop.permute.xlu0 %1794 }
0x1550   :  { %v1799_v40 = vadd.f32 %v1795_v39, %v1779_v38  ;;  %v1687_v17 = vpop.permute.xlu1 %1686 }
0x1551   :  { %v1689_v53 = vadd.f32 %v1687_v17, %v1679_v41 }
0x1552   :  { %2510 = vtanh.f32 %v1799_v40 }
0x1553   :  { %2512 = vtanh.f32 %v1689_v53 }
0x1554   :  { %v1793_v46 = vpop.permute.xlu1 %1792 }
0x1555   :  { %v1798_v47 = vadd.f32 %v1793_v46, %v1778_v43 }
0x1557   :  { %2514 = vtanh.f32 %v1798_v47 }
0x155f   :  { %v2511_v12 = vpop.eup %2510 }
0x1560   :  { %1806 = vrot.lane.b32.xlu1 %v2511_v12, %s2658_s5  ;;  %v2513_v49 = vpop.eup %2512 }
0x1561   :  { %1692 = vrot.lane.b32.xlu0 %v2513_v49, %s2658_s5 }
0x1564   :  { %v2515_v8 = vpop.eup %2514 }
0x1565   :  { %1804 = vrot.lane.b32.xlu0 %v2515_v8, %s2658_s5 }
0x15d2   :  { %v1807_v51 = vpop.permute.xlu1 %1806 }
0x15d3   :  { %v1693_v36 = vpop.permute.xlu0 %1692  ;;  %v1811_v52 = vmul.f32 %v2505_v24, %v1807_v51 }
0x15d4   :  { %v1695_v54 = vmul.f32 %v2507_v27, %v1693_v36  ;;  %v2085_v27 = vld [vmem:[%s3253_s9] ss:$0 sm:$0xff] }
0x15d5   :  { %v1814_v55 = vrot.slane %v1811_v52, 7 }
0x15d6   :  { %v1822_v32 = vrot.slane %v1695_v54, 1 }
0x15d7   :  { %v1805_v9 = vpop.permute.xlu0 %1804 }
0x15d8   :  { %v1810_v57 = vmul.f32 %v2509_v10, %v1805_v9  ;;  %1823 = vrot.lane.b32.xlu0 %v1822_v32, %s2660_s13 }
0x15da   :  { %v2327_v58 = vpack.i.bf16 %v1814_v55, %v1810_v57 }
0x15dc   :  { %2328 = vrot.lane.b32.xlu1 %v2327_v58, %s2659_s11 }
0x164a   :  { %v1824_v61 = vpop.permute.xlu0 %1823 }
0x164e   :  { %v2329_v11 = vpop.permute.xlu1 %2328 }
0x164f   :  { %v2331_v30 = vunpack.i.h.bf16 %v2329_v11  ;;  %v2330_v60 = vunpack.i.l.bf16 %v2329_v11 }
0x1651   :  { %v1826_v62 = vsel %vm251_vm3, %v2330_v60, %v1824_v61  ;;  %v1827_v63 = vsel %vm251_vm3, %v2331_v30, %v1824_v61 }
0x1652   :  { %v1828_v0 = vpack.c.bf16 %v1827_v63, %v1826_v62 }
0x1654   :  { %v1830_v1 = vshrl.u32 %v1828_v0, 16  ;;  %v1833_v44 = vshll.u32 %v1828_v0, 16 }
0x1656   :  { %v1832_v33 = vrot.slane %v1830_v1, 3  ;;  %v1835_v3 = vrot.slane %v1833_v44, 4 }
0x1658   :  { %v1836_v4 = vor.u32 %v1835_v3, %v1832_v33 }
0x165a   :  { %2300 = vmatmul.mubr.msk.bf16.vlgmr.msra.gmra.mxu1 %vm410_vm6, %v1836_v4 }
0x171a   :  { %v1874_v5 = vpop.f32.mrf.mxu1 }
0x171b   :  { %v1875_v7 = vadd.f32 %v3160_v28, %v1874_v5 }
0x171c   :  { %v2301_v16 = vpop.f32.mrf.mxu1 }
0x171d   :  { %2516 = vtanh.f32 %v1875_v7  ;;  %v2084_v48 = vmul.f32 -1.442695, %v1875_v7 }
0x171e   :  { %v1877_v50 = vpop.f32.mrf.mxu1 }
0x171f   :  { %2518 = vpow2.f32 %v2084_v48 }
0x1720   :  { %v2302_v34 = vpop.f32.mrf.mxu1 }
0x172a   :  { %v2517_v45 = vpop.eup %2516 }
0x172b   :  { %1889 = vrot.lane.b32.xlu1 %v2517_v45, %s2657_s29 }
0x172c   :  { %v2519_v37 = vpop.eup %2518 }
0x172d   :  { %v1883_v14 = vadd.f32 1.0, %v2519_v37 }
0x172f   :  { %2520 = vrcp.f32 %v1883_v14 }
0x173c   :  { %v2521_v18 = vpop.eup %2520 }
0x173d   :  { %v1887_v21 = vmul.f32 %v2521_v18, %v1689_v53 }
0x179d   :  { %v1890_v19 = vpop.permute.xlu1 %1889 }
0x179e   :  { %v1892_v20 = vmul.f32 %v2521_v18, %v1890_v19 }
0x17a0   :  { %1894 = vrot.lane.b32.xlu0 %v1892_v20, %s2658_s5 }
0x1812   :  { %v1895_v22 = vpop.permute.xlu0 %1894 }
0x1813   :  { %v1897_v28 = vadd.f32 %v1895_v22, %v1887_v21 }
0x1815   :  { %2522 = vtanh.f32 %v1897_v28 }
0x1822   :  { %v2523_v56 = vpop.eup %2522 }
0x1823   :  { %1900 = vrot.lane.b32.xlu1 %v2523_v56, %s2658_s5 }
0x1895   :  { %v1901_v24 = vpop.permute.xlu1 %1900 }
0x1896   :  { %v1903_v25 = vmul.f32 %v2521_v18, %v1901_v24 }
0x1898   :  { %1915 = vrot.lane.b32.xlu0 %v1903_v25, %s2659_s11 }
0x190a   :  { %v1916_v26 = vpop.permute.xlu0 %1915 }
0x190b   :  { %2310 = vmatmul.mubr.msk.f32.vlgmr.msra.gmra.mxu0 %vm251_vm3, %v1916_v26 }
0x19cb   :  { %v1988_v29 = vpop.f32.mrf.mxu0 }
0x19cc   :  { %v1989_v2 = vadd.f32 %v2085_v27, %v1988_v29 }
0x19cd   :  { %v2311_v31 = vpop.f32.mrf.mxu0 }
0x19ce   :  { %1993 = vst.msk [vmem:[#allocation13] sm:$0x3] %vm1992_vm13, %v1989_v2 }
0x19cf   :  { %2628 = shalt.err (!%p2625_p1)
}
0x19d0   :  { %2003 = dma.vmem_to_hbm [thread:$0]  %s2001_s8, 32, %s3254_s10, [#allocation5]  }
0x19d1   :  { %2645 = dma.done.wait [#allocation5], 32  }
0x19d2   :  { %2646 = vsyncadd [#allocation5], 4294967264 }
0x19d3   :  { %2007 = vsyncpa [#allocation4], 1 }
0x19d4   :  { %2008 = vsyncpa [#allocation9], 1 }
0x19d5   :  { %2009 = vsyncpa [#allocation12], 1 }
0x19d6   :  { %2010 = vsyncpa [#allocation5], 1 }
0x19d7   :  { %2011 = vsyncpa [#allocation6], 1 }

</bundles_post_ra>
